<compile_context>
chip_gen: v7x
topology: tpu7x:2x2x1
jax: 0.10.0
libtpu: 0.0.40
codegen_flags: <defaults>
</compile_context>

<pallas_src>
import functools

import jax
import jax.numpy as jnp
from jax import lax
from jax.experimental import pallas as pl
from jax.experimental.pallas import tpu as pltpu


def _round_up(x, m):
    return (x + m - 1) // m * m


# ----------------------------------------------------------------------------
# Pallas kernel: fused (matmul + per-channel affine + optional ReLU)
# ----------------------------------------------------------------------------
def _matmul_affine_kernel(lhs_ref, rhs_ref, scale_ref, bias_ref, out_ref, *,
                          apply_relu):
    acc = jnp.dot(lhs_ref[...], rhs_ref[...],
                  preferred_element_type=jnp.float32)
    acc = acc * scale_ref[...] + bias_ref[...]
    if apply_relu:
        acc = jnp.maximum(acc, 0.0)
    out_ref[...] = acc.astype(out_ref.dtype)


def _fused_matmul(lhs, rhs, scale, bias, apply_relu):
    """out[:M] = maybe_relu((lhs @ rhs) * scale + bias), lhs (M,K), rhs (K,C)."""
    M, K = lhs.shape
    Kr, Cout = rhs.shape
    assert K == Kr

    # Pad K to a multiple of 8 (sublane alignment for rhs, lane for lhs).
    Kp = _round_up(K, 8)
    if Kp != K:
        lhs = jnp.pad(lhs, ((0, 0), (0, Kp - K)))
        rhs = jnp.pad(rhs, ((0, Kp - K), (0, 0)))

    # Large M-tiles (multiple of 8), capped so each input block is ~<= 2 MiB.
    cap = max(8, ((2 << 20) // (4 * max(Kp, Cout))) // 8 * 8)
    tile_m = max(8, min(_round_up(M, 8), 512, cap))
    Mp = _round_up(M, tile_m)
    if Mp != M:
        lhs = jnp.pad(lhs, ((0, Mp - M), (0, 0)))

    scale2 = scale.reshape(1, Cout).astype(jnp.float32)
    bias2 = bias.reshape(1, Cout).astype(jnp.float32)

    kernel = functools.partial(_matmul_affine_kernel, apply_relu=apply_relu)
    out = pl.pallas_call(
        kernel,
        out_shape=jax.ShapeDtypeStruct((Mp, Cout), jnp.float32),
        grid=(Mp // tile_m,),
        in_specs=[
            pl.BlockSpec((tile_m, Kp), lambda i: (i, 0)),
            pl.BlockSpec((Kp, Cout), lambda i: (0, 0)),
            pl.BlockSpec((1, Cout), lambda i: (0, 0)),
            pl.BlockSpec((1, Cout), lambda i: (0, 0)),
        ],
        out_specs=pl.BlockSpec((tile_m, Cout), lambda i: (i, 0)),
        compiler_params=pltpu.CompilerParams(
            dimension_semantics=("parallel",)),
        cost_estimate=pl.CostEstimate(
            flops=2 * Mp * Kp * Cout,
            transcendentals=0,
            bytes_accessed=4 * (Mp * Kp + Kp * Cout + Mp * Cout),
        ),
    )(lhs, rhs, scale2, bias2)
    return out[:M]


# ----------------------------------------------------------------------------
# Layout plumbing (wrapper side): im2col, conv, transposed conv
# ----------------------------------------------------------------------------
def _im2col(x_nhwc, ksize, stride, pad):
    N, H, W, C = x_nhwc.shape
    if pad:
        x_nhwc = jnp.pad(x_nhwc, ((0, 0), (pad, pad), (pad, pad), (0, 0)))
    Ho = (H + 2 * pad - ksize) // stride + 1
    Wo = (W + 2 * pad - ksize) // stride + 1
    cols = []
    for kh in range(ksize):
        for kw in range(ksize):
            patch = x_nhwc[:,
                           kh: kh + stride * (Ho - 1) + 1: stride,
                           kw: kw + stride * (Wo - 1) + 1: stride,
                           :]
            cols.append(patch)
    patches = jnp.concatenate(cols, axis=-1)          # (N, Ho, Wo, k*k*C)
    return patches.reshape(N * Ho * Wo, ksize * ksize * C), (N, Ho, Wo)


def conv2d_3x3(x_nchw, w_oihw, *, stride, relu, scale=None, bias=None):
    """Conv2d(k=3, pad=1, bias=False) + optional per-channel affine + ReLU."""
    N, Cin, H, W = x_nchw.shape
    Cout = w_oihw.shape[0]
    if scale is None:
        scale = jnp.ones((Cout,), jnp.float32)
    if bias is None:
        bias = jnp.zeros((Cout,), jnp.float32)
    xh = jnp.transpose(x_nchw, (0, 2, 3, 1)).astype(jnp.float32)
    lhs, (n, ho, wo) = _im2col(xh, 3, stride, 1)
    rhs = jnp.transpose(w_oihw, (2, 3, 1, 0)).reshape(9 * Cin, Cout)
    out = _fused_matmul(lhs, rhs.astype(jnp.float32), scale, bias, relu)
    return jnp.transpose(out.reshape(n, ho, wo, Cout), (0, 3, 1, 2))


def deconv2d_3x3_s2(x_nchw, wt_iohw, *, scale, bias, relu):
    """ConvTranspose2d(k=3, stride=2, pad=1, output_padding=1, bias=False)
    + folded BatchNorm + optional ReLU, as a stride-1 conv on a zero-dilated
    input with a spatially flipped, channel-swapped kernel."""
    N, Cin, H, W = x_nchw.shape
    Cout = wt_iohw.shape[1]
    w_conv = jnp.transpose(wt_iohw[:, :, ::-1, ::-1], (1, 0, 2, 3))  # OIHW
    xh = jnp.transpose(x_nchw, (0, 2, 3, 1)).astype(jnp.float32)
    # zero-dilate (stride 2) and pad: 1 top/left, 2 bottom/right -> (2H+2, 2W+2)
    up = jnp.zeros((N, 2 * H + 2, 2 * W + 2, Cin), jnp.float32)
    up = up.at[:, 1:2 * H:2, 1:2 * W:2, :].set(xh)
    lhs, (n, ho, wo) = _im2col(up, 3, 1, 0)            # ho = 2H, wo = 2W
    rhs = jnp.transpose(w_conv, (2, 3, 1, 0)).reshape(9 * Cin, Cout)
    out = _fused_matmul(lhs, rhs.astype(jnp.float32), scale, bias, relu)
    return jnp.transpose(out.reshape(n, ho, wo, Cout), (0, 3, 1, 2))


def _fold_bn(gamma, beta, mean, var, eps=1e-5):
    scale = gamma / jnp.sqrt(var + eps)
    bias = beta - mean * scale
    return scale.astype(jnp.float32), bias.astype(jnp.float32)


# ----------------------------------------------------------------------------
# hourglass_1 forward
# ----------------------------------------------------------------------------
@jax.jit
def hourglass_1_forward(params, x, em1, em2):
    # conv1 = conv(s2)+ReLU ; conv2 = conv(s1) then ReLU in forward
    y = conv2d_3x3(x, params["w1"], stride=2, relu=True)
    y = conv2d_3x3(y, params["w2"], stride=1, relu=True)
    x_cat = jnp.concatenate([y, em1], axis=1)                  # (N, 2C, H/2, W/2)
    # conv3 = conv(s2)+ReLU ; conv4 = conv(s1) then ReLU in forward
    z = conv2d_3x3(x_cat, params["w3"], stride=2, relu=True)
    z = conv2d_3x3(z, params["w4"], stride=1, relu=True)
    x_prime = jnp.concatenate([z, em2], axis=1)                # (N, 4C, H/4, W/4)
    # conv5 = deconv + BN + ReLU ; conv6 = deconv + BN
    s5, b5 = _fold_bn(params["bn5_gamma"], params["bn5_beta"],
                      params["bn5_mean"], params["bn5_var"])
    out = deconv2d_3x3_s2(x_prime, params["w5"], scale=s5, bias=b5, relu=True)
    s6, b6 = _fold_bn(params["bn6_gamma"], params["bn6_beta"],
                      params["bn6_mean"], params["bn6_var"])
    out = deconv2d_3x3_s2(out, params["w6"], scale=s6, bias=b6, relu=False)
    return out, x_cat, x_prime


# ----------------------------------------------------------------------------
# Pure-JAX reference (XLA convs) for correctness checking
# ----------------------------------------------------------------------------
def _conv_ref(x, w, stride, relu):
    y = lax.conv_general_dilated(x, w, window_strides=(stride, stride),
                                 padding=((1, 1), (1, 1)),
                                 dimension_numbers=("NCHW", "OIHW", "NCHW"),
                                 precision=lax.Precision.HIGHEST)
    return jnp.maximum(y, 0.0) if relu else y


def _deconv_ref(x, wt, scale, bias, relu):
    w_conv = jnp.transpose(wt[:, :, ::-1, ::-1], (1, 0, 2, 3))
    y = lax.conv_general_dilated(x, w_conv, window_strides=(1, 1),
                                 padding=((1, 2), (1, 2)),
                                 lhs_dilation=(2, 2),
                                 dimension_numbers=("NCHW", "OIHW", "NCHW"),
                                 precision=lax.Precision.HIGHEST)
    y = y * scale[None, :, None, None] + bias[None, :, None, None]
    return jnp.maximum(y, 0.0) if relu else y


def hourglass_1_ref(params, x, em1, em2):
    y = _conv_ref(x, params["w1"], 2, True)
    y = _conv_ref(y, params["w2"], 1, True)
    x_cat = jnp.concatenate([y, em1], axis=1)
    z = _conv_ref(x_cat, params["w3"], 2, True)
    z = _conv_ref(z, params["w4"], 1, True)
    x_prime = jnp.concatenate([z, em2], axis=1)
    s5, b5 = _fold_bn(params["bn5_gamma"], params["bn5_beta"],
                      params["bn5_mean"], params["bn5_var"])
    out = _deconv_ref(x_prime, params["w5"], s5, b5, True)
    s6, b6 = _fold_bn(params["bn6_gamma"], params["bn6_beta"],
                      params["bn6_mean"], params["bn6_var"])
    out = _deconv_ref(out, params["w6"], s6, b6, False)
    return out, x_cat, x_prime


if __name__ == "__main__":
    key = jax.random.PRNGKey(0)
    ks = jax.random.split(key, 17)

    N, C, H, W = 2, 4, 16, 16          # channels_in = 4
    x = jax.random.normal(ks[0], (N, C, H, W), jnp.float32)
    em1 = jax.random.normal(ks[1], (N, C, H // 2, W // 2), jnp.float32)
    em2 = jax.random.normal(ks[2], (N, 2 * C, H // 4, W // 4), jnp.float32)

    def conv_w(k, o, i):
        return 0.2 * jax.random.normal(k, (o, i, 3, 3), jnp.float32)

    params = {
        "w1": conv_w(ks[3], C, C),
        "w2": conv_w(ks[4], C, C),
        "w3": conv_w(ks[5], 2 * C, 2 * C),
        "w4": conv_w(ks[6], 2 * C, 2 * C),
        # ConvTranspose2d weights have shape (Cin, Cout, kh, kw)
        "w5": 0.2 * jax.random.normal(ks[7], (4 * C, 2 * C, 3, 3), jnp.float32),
        "w6": 0.2 * jax.random.normal(ks[8], (2 * C, C, 3, 3), jnp.float32),
        "bn5_gamma": 1.0 + 0.1 * jax.random.normal(ks[9], (2 * C,), jnp.float32),
        "bn5_beta": 0.1 * jax.random.normal(ks[10], (2 * C,), jnp.float32),
        "bn5_mean": 0.1 * jax.random.normal(ks[11], (2 * C,), jnp.float32),
        "bn5_var": jnp.abs(1.0 + 0.1 * jax.random.normal(ks[12], (2 * C,),
                                                         jnp.float32)),
        "bn6_gamma": 1.0 + 0.1 * jax.random.normal(ks[13], (C,), jnp.float32),
        "bn6_beta": 0.1 * jax.random.normal(ks[14], (C,), jnp.float32),
        "bn6_mean": 0.1 * jax.random.normal(ks[15], (C,), jnp.float32),
        "bn6_var": jnp.abs(1.0 + 0.1 * jax.random.normal(ks[16], (C,),
                                                         jnp.float32)),
    }

    out, xc, xp = jax.block_until_ready(hourglass_1_forward(params, x, em1, em2))
    out_r, xc_r, xp_r = jax.block_until_ready(hourglass_1_ref(params, x, em1, em2))

    assert out.shape == (N, C, H, W)
    assert xc.shape == (N, 2 * C, H // 2, W // 2)
    assert xp.shape == (N, 4 * C, H // 4, W // 4)
    for a, b in ((out, out_r), (xc, xc_r), (xp, xp_r)):
        err = float(jnp.max(jnp.abs(a - b)))
        assert jnp.allclose(a, b, rtol=1e-3, atol=1e-2), err

    print("KERNEL_OK")
</pallas_src>

<mosaic_0001>
module attributes {stable_mosaic.version = 11 : i64} {
  func.func @_matmul_affine_kernel(%arg0: i32, %arg1: memref<128x40xf32, #tpu.memory_space<vmem>>, %arg2: memref<40x4xf32, #tpu.memory_space<vmem>>, %arg3: memref<1x4xf32, #tpu.memory_space<vmem>>, %arg4: memref<1x4xf32, #tpu.memory_space<vmem>>, %arg5: memref<128x4xf32, #tpu.memory_space<vmem>>) attributes {dimension_semantics = [#tpu.dimension_semantics<parallel>], iteration_bounds = array<i64: 1>, scalar_prefetch = 0 : i64, scratch_operands = 0 : i64, tpu.core_type = #tpu.core_type<tc>, window_params = [{transform_indices = @transform_0, window_bounds = array<i64: 128, 40>}, {pipeline_mode = #tpu.pipeline_mode<synchronous>, transform_indices = @transform_1, window_bounds = array<i64: 40, 4>}, {pipeline_mode = #tpu.pipeline_mode<synchronous>, transform_indices = @transform_2, window_bounds = array<i64: 1, 4>}, {pipeline_mode = #tpu.pipeline_mode<synchronous>, transform_indices = @transform_3, window_bounds = array<i64: 1, 4>}, {transform_indices = @transform_4, window_bounds = array<i64: 128, 4>}]} {
    %c0 = arith.constant 0 : index
    %c0_0 = arith.constant 0 : index
    %0 = vector.load %arg1[%c0, %c0_0] : memref<128x40xf32, #tpu.memory_space<vmem>>, vector<128x40xf32>
    %c0_1 = arith.constant 0 : index
    %c0_2 = arith.constant 0 : index
    %1 = vector.load %arg2[%c0_1, %c0_2] : memref<40x4xf32, #tpu.memory_space<vmem>>, vector<40x4xf32>
    %cst = arith.constant dense<0.000000e+00> : vector<128x4xf32>
    %2 = tpu.matmul %0, %1, %cst {dimension_numbers = #tpu.dot_dimension_numbers<[1], [0], [0], [1], [0, 0, 1, 1], [], []>} : vector<128x40xf32>, vector<40x4xf32>, vector<128x4xf32> -> vector<128x4xf32>
    %c0_3 = arith.constant 0 : index
    %c0_4 = arith.constant 0 : index
    %3 = vector.load %arg3[%c0_3, %c0_4] : memref<1x4xf32, #tpu.memory_space<vmem>>, vector<1x4xf32>
    %4 = vector.broadcast %3 : vector<1x4xf32> to vector<128x4xf32>
    %5 = arith.mulf %2, %4 : vector<128x4xf32>
    %c0_5 = arith.constant 0 : index
    %c0_6 = arith.constant 0 : index
    %6 = vector.load %arg4[%c0_5, %c0_6] : memref<1x4xf32, #tpu.memory_space<vmem>>, vector<1x4xf32>
    %7 = vector.broadcast %6 : vector<1x4xf32> to vector<128x4xf32>
    %8 = arith.addf %5, %7 : vector<128x4xf32>
    %cst_7 = arith.constant 0.000000e+00 : f32
    %9 = vector.broadcast %cst_7 : f32 to vector<128x4xf32>
    %10 = arith.maximumf %8, %9 : vector<128x4xf32>
    %c0_8 = arith.constant 0 : index
    %c0_9 = arith.constant 0 : index
    %11 = vector.load %arg5[%c0_8, %c0_9] : memref<128x4xf32, #tpu.memory_space<vmem>>, vector<128x4xf32>
    tpu.vector_store %arg5[%c0_8, %c0_9], %10 {strides = array<i32>} : memref<128x4xf32, #tpu.memory_space<vmem>>, vector<128x4xf32>,
    return
  }
  func.func @transform_0(%arg0: i32) -> (i32, i32) {
    %c0_i32 = arith.constant 0 : i32
    %c0_i32_0 = arith.constant 0 : i32
    return %arg0, %c0_i32 : i32, i32
  }
  func.func @transform_1(%arg0: i32) -> (i32, i32) {
    %c0_i32 = arith.constant 0 : i32
    %c0_i32_0 = arith.constant 0 : i32
    %c0_i32_1 = arith.constant 0 : i32
    return %c0_i32, %c0_i32_0 : i32, i32
  }
  func.func @transform_2(%arg0: i32) -> (i32, i32) {
    %c0_i32 = arith.constant 0 : i32
    %c0_i32_0 = arith.constant 0 : i32
    %c0_i32_1 = arith.constant 0 : i32
    return %c0_i32, %c0_i32_0 : i32, i32
  }
  func.func @transform_3(%arg0: i32) -> (i32, i32) {
    %c0_i32 = arith.constant 0 : i32
    %c0_i32_0 = arith.constant 0 : i32
    %c0_i32_1 = arith.constant 0 : i32
    return %c0_i32, %c0_i32_0 : i32, i32
  }
  func.func @transform_4(%arg0: i32) -> (i32, i32) {
    %c0_i32 = arith.constant 0 : i32
    %c0_i32_0 = arith.constant 0 : i32
    return %arg0, %c0_i32 : i32, i32
  }
}

module attributes {stable_mosaic.version = 11 : i64} {
  func.func @_matmul_affine_kernel(%arg0: i32, %arg1: memref<32x72xf32, #tpu.memory_space<vmem>>, %arg2: memref<72x8xf32, #tpu.memory_space<vmem>>, %arg3: memref<1x8xf32, #tpu.memory_space<vmem>>, %arg4: memref<1x8xf32, #tpu.memory_space<vmem>>, %arg5: memref<32x8xf32, #tpu.memory_space<vmem>>) attributes {dimension_semantics = [#tpu.dimension_semantics<parallel>], iteration_bounds = array<i64: 1>, scalar_prefetch = 0 : i64, scratch_operands = 0 : i64, tpu.core_type = #tpu.core_type<tc>, window_params = [{transform_indices = @transform_0, window_bounds = array<i64: 32, 72>}, {pipeline_mode = #tpu.pipeline_mode<synchronous>, transform_indices = @transform_1, window_bounds = array<i64: 72, 8>}, {pipeline_mode = #tpu.pipeline_mode<synchronous>, transform_indices = @transform_2, window_bounds = array<i64: 1, 8>}, {pipeline_mode = #tpu.pipeline_mode<synchronous>, transform_indices = @transform_3, window_bounds = array<i64: 1, 8>}, {transform_indices = @transform_4, window_bounds = array<i64: 32, 8>}]} {
    %c0 = arith.constant 0 : index
    %c0_0 = arith.constant 0 : index
    %0 = vector.load %arg1[%c0, %c0_0] : memref<32x72xf32, #tpu.memory_space<vmem>>, vector<32x72xf32>
    %c0_1 = arith.constant 0 : index
    %c0_2 = arith.constant 0 : index
    %1 = vector.load %arg2[%c0_1, %c0_2] : memref<72x8xf32, #tpu.memory_space<vmem>>, vector<72x8xf32>
    %cst = arith.constant dense<0.000000e+00> : vector<32x8xf32>
    %2 = tpu.matmul %0, %1, %cst {dimension_numbers = #tpu.dot_dimension_numbers<[1], [0], [0], [1], [0, 0, 1, 1], [], []>} : vector<32x72xf32>, vector<72x8xf32>, vector<32x8xf32> -> vector<32x8xf32>
    %c0_3 = arith.constant 0 : index
    %c0_4 = arith.constant 0 : index
    %3 = vector.load %arg3[%c0_3, %c0_4] : memref<1x8xf32, #tpu.memory_space<vmem>>, vector<1x8xf32>
    %4 = vector.broadcast %3 : vector<1x8xf32> to vector<32x8xf32>
    %5 = arith.mulf %2, %4 : vector<32x8xf32>
    %c0_5 = arith.constant 0 : index
    %c0_6 = arith.constant 0 : index
    %6 = vector.load %arg4[%c0_5, %c0_6] : memref<1x8xf32, #tpu.memory_space<vmem>>, vector<1x8xf32>
    %7 = vector.broadcast %6 : vector<1x8xf32> to vector<32x8xf32>
    %8 = arith.addf %5, %7 : vector<32x8xf32>
    %cst_7 = arith.constant 0.000000e+00 : f32
    %9 = vector.broadcast %cst_7 : f32 to vector<32x8xf32>
    %10 = arith.maximumf %8, %9 : vector<32x8xf32>
    %c0_8 = arith.constant 0 : index
    %c0_9 = arith.constant 0 : index
    %11 = vector.load %arg5[%c0_8, %c0_9] : memref<32x8xf32, #tpu.memory_space<vmem>>, vector<32x8xf32>
    tpu.vector_store %arg5[%c0_8, %c0_9], %10 {strides = array<i32>} : memref<32x8xf32, #tpu.memory_space<vmem>>, vector<32x8xf32>,
    return
  }
  func.func @transform_0(%arg0: i32) -> (i32, i32) {
    %c0_i32 = arith.constant 0 : i32
    %c0_i32_0 = arith.constant 0 : i32
    return %arg0, %c0_i32 : i32, i32
  }
  func.func @transform_1(%arg0: i32) -> (i32, i32) {
    %c0_i32 = arith.constant 0 : i32
    %c0_i32_0 = arith.constant 0 : i32
    %c0_i32_1 = arith.constant 0 : i32
    return %c0_i32, %c0_i32_0 : i32, i32
  }
  func.func @transform_2(%arg0: i32) -> (i32, i32) {
    %c0_i32 = arith.constant 0 : i32
    %c0_i32_0 = arith.constant 0 : i32
    %c0_i32_1 = arith.constant 0 : i32
    return %c0_i32, %c0_i32_0 : i32, i32
  }
  func.func @transform_3(%arg0: i32) -> (i32, i32) {
    %c0_i32 = arith.constant 0 : i32
    %c0_i32_0 = arith.constant 0 : i32
    %c0_i32_1 = arith.constant 0 : i32
    return %c0_i32, %c0_i32_0 : i32, i32
  }
  func.func @transform_4(%arg0: i32) -> (i32, i32) {
    %c0_i32 = arith.constant 0 : i32
    %c0_i32_0 = arith.constant 0 : i32
    return %arg0, %c0_i32 : i32, i32
  }
}

module attributes {stable_mosaic.version = 11 : i64} {
  func.func @_matmul_affine_kernel(%arg0: i32, %arg1: memref<128x144xf32, #tpu.memory_space<vmem>>, %arg2: memref<144x8xf32, #tpu.memory_space<vmem>>, %arg3: memref<1x8xf32, #tpu.memory_space<vmem>>, %arg4: memref<1x8xf32, #tpu.memory_space<vmem>>, %arg5: memref<128x8xf32, #tpu.memory_space<vmem>>) attributes {dimension_semantics = [#tpu.dimension_semantics<parallel>], iteration_bounds = array<i64: 1>, scalar_prefetch = 0 : i64, scratch_operands = 0 : i64, tpu.core_type = #tpu.core_type<tc>, window_params = [{transform_indices = @transform_0, window_bounds = array<i64: 128, 144>}, {pipeline_mode = #tpu.pipeline_mode<synchronous>, transform_indices = @transform_1, window_bounds = array<i64: 144, 8>}, {pipeline_mode = #tpu.pipeline_mode<synchronous>, transform_indices = @transform_2, window_bounds = array<i64: 1, 8>}, {pipeline_mode = #tpu.pipeline_mode<synchronous>, transform_indices = @transform_3, window_bounds = array<i64: 1, 8>}, {transform_indices = @transform_4, window_bounds = array<i64: 128, 8>}]} {
    %c0 = arith.constant 0 : index
    %c0_0 = arith.constant 0 : index
    %0 = vector.load %arg1[%c0, %c0_0] : memref<128x144xf32, #tpu.memory_space<vmem>>, vector<128x144xf32>
    %c0_1 = arith.constant 0 : index
    %c0_2 = arith.constant 0 : index
    %1 = vector.load %arg2[%c0_1, %c0_2] : memref<144x8xf32, #tpu.memory_space<vmem>>, vector<144x8xf32>
    %cst = arith.constant dense<0.000000e+00> : vector<128x8xf32>
    %2 = tpu.matmul %0, %1, %cst {dimension_numbers = #tpu.dot_dimension_numbers<[1], [0], [0], [1], [0, 0, 1, 1], [], []>} : vector<128x144xf32>, vector<144x8xf32>, vector<128x8xf32> -> vector<128x8xf32>
    %c0_3 = arith.constant 0 : index
    %c0_4 = arith.constant 0 : index
    %3 = vector.load %arg3[%c0_3, %c0_4] : memref<1x8xf32, #tpu.memory_space<vmem>>, vector<1x8xf32>
    %4 = vector.broadcast %3 : vector<1x8xf32> to vector<128x8xf32>
    %5 = arith.mulf %2, %4 : vector<128x8xf32>
    %c0_5 = arith.constant 0 : index
    %c0_6 = arith.constant 0 : index
    %6 = vector.load %arg4[%c0_5, %c0_6] : memref<1x8xf32, #tpu.memory_space<vmem>>, vector<1x8xf32>
    %7 = vector.broadcast %6 : vector<1x8xf32> to vector<128x8xf32>
    %8 = arith.addf %5, %7 : vector<128x8xf32>
    %cst_7 = arith.constant 0.000000e+00 : f32
    %9 = vector.broadcast %cst_7 : f32 to vector<128x8xf32>
    %10 = arith.maximumf %8, %9 : vector<128x8xf32>
    %c0_8 = arith.constant 0 : index
    %c0_9 = arith.constant 0 : index
    %11 = vector.load %arg5[%c0_8, %c0_9] : memref<128x8xf32, #tpu.memory_space<vmem>>, vector<128x8xf32>
    tpu.vector_store %arg5[%c0_8, %c0_9], %10 {strides = array<i32>} : memref<128x8xf32, #tpu.memory_space<vmem>>, vector<128x8xf32>,
    return
  }
  func.func @transform_0(%arg0: i32) -> (i32, i32) {
    %c0_i32 = arith.constant 0 : i32
    %c0_i32_0 = arith.constant 0 : i32
    return %arg0, %c0_i32 : i32, i32
  }
  func.func @transform_1(%arg0: i32) -> (i32, i32) {
    %c0_i32 = arith.constant 0 : i32
    %c0_i32_0 = arith.constant 0 : i32
    %c0_i32_1 = arith.constant 0 : i32
    return %c0_i32, %c0_i32_0 : i32, i32
  }
  func.func @transform_2(%arg0: i32) -> (i32, i32) {
    %c0_i32 = arith.constant 0 : i32
    %c0_i32_0 = arith.constant 0 : i32
    %c0_i32_1 = arith.constant 0 : i32
    return %c0_i32, %c0_i32_0 : i32, i32
  }
  func.func @transform_3(%arg0: i32) -> (i32, i32) {
    %c0_i32 = arith.constant 0 : i32
    %c0_i32_0 = arith.constant 0 : i32
    %c0_i32_1 = arith.constant 0 : i32
    return %c0_i32, %c0_i32_0 : i32, i32
  }
  func.func @transform_4(%arg0: i32) -> (i32, i32) {
    %c0_i32 = arith.constant 0 : i32
    %c0_i32_0 = arith.constant 0 : i32
    return %arg0, %c0_i32 : i32, i32
  }
}

module attributes {stable_mosaic.version = 11 : i64} {
  func.func @_matmul_affine_kernel(%arg0: i32, %arg1: memref<512x72xf32, #tpu.memory_space<vmem>>, %arg2: memref<72x4xf32, #tpu.memory_space<vmem>>, %arg3: memref<1x4xf32, #tpu.memory_space<vmem>>, %arg4: memref<1x4xf32, #tpu.memory_space<vmem>>, %arg5: memref<512x4xf32, #tpu.memory_space<vmem>>) attributes {dimension_semantics = [#tpu.dimension_semantics<parallel>], iteration_bounds = array<i64: 1>, scalar_prefetch = 0 : i64, scratch_operands = 0 : i64, tpu.core_type = #tpu.core_type<tc>, window_params = [{transform_indices = @transform_0, window_bounds = array<i64: 512, 72>}, {pipeline_mode = #tpu.pipeline_mode<synchronous>, transform_indices = @transform_1, window_bounds = array<i64: 72, 4>}, {pipeline_mode = #tpu.pipeline_mode<synchronous>, transform_indices = @transform_2, window_bounds = array<i64: 1, 4>}, {pipeline_mode = #tpu.pipeline_mode<synchronous>, transform_indices = @transform_3, window_bounds = array<i64: 1, 4>}, {transform_indices = @transform_4, window_bounds = array<i64: 512, 4>}]} {
    %c0 = arith.constant 0 : index
    %c0_0 = arith.constant 0 : index
    %0 = vector.load %arg1[%c0, %c0_0] : memref<512x72xf32, #tpu.memory_space<vmem>>, vector<512x72xf32>
    %c0_1 = arith.constant 0 : index
    %c0_2 = arith.constant 0 : index
    %1 = vector.load %arg2[%c0_1, %c0_2] : memref<72x4xf32, #tpu.memory_space<vmem>>, vector<72x4xf32>
    %cst = arith.constant dense<0.000000e+00> : vector<512x4xf32>
    %2 = tpu.matmul %0, %1, %cst {dimension_numbers = #tpu.dot_dimension_numbers<[1], [0], [0], [1], [0, 0, 1, 1], [], []>} : vector<512x72xf32>, vector<72x4xf32>, vector<512x4xf32> -> vector<512x4xf32>
    %c0_3 = arith.constant 0 : index
    %c0_4 = arith.constant 0 : index
    %3 = vector.load %arg3[%c0_3, %c0_4] : memref<1x4xf32, #tpu.memory_space<vmem>>, vector<1x4xf32>
    %4 = vector.broadcast %3 : vector<1x4xf32> to vector<512x4xf32>
    %5 = arith.mulf %2, %4 : vector<512x4xf32>
    %c0_5 = arith.constant 0 : index
    %c0_6 = arith.constant 0 : index
    %6 = vector.load %arg4[%c0_5, %c0_6] : memref<1x4xf32, #tpu.memory_space<vmem>>, vector<1x4xf32>
    %7 = vector.broadcast %6 : vector<1x4xf32> to vector<512x4xf32>
    %8 = arith.addf %5, %7 : vector<512x4xf32>
    %c0_7 = arith.constant 0 : index
    %c0_8 = arith.constant 0 : index
    %9 = vector.load %arg5[%c0_7, %c0_8] : memref<512x4xf32, #tpu.memory_space<vmem>>, vector<512x4xf32>
    tpu.vector_store %arg5[%c0_7, %c0_8], %8 {strides = array<i32>} : memref<512x4xf32, #tpu.memory_space<vmem>>, vector<512x4xf32>,
    return
  }
  func.func @transform_0(%arg0: i32) -> (i32, i32) {
    %c0_i32 = arith.constant 0 : i32
    %c0_i32_0 = arith.constant 0 : i32
    return %arg0, %c0_i32 : i32, i32
  }
  func.func @transform_1(%arg0: i32) -> (i32, i32) {
    %c0_i32 = arith.constant 0 : i32
    %c0_i32_0 = arith.constant 0 : i32
    %c0_i32_1 = arith.constant 0 : i32
    return %c0_i32, %c0_i32_0 : i32, i32
  }
  func.func @transform_2(%arg0: i32) -> (i32, i32) {
    %c0_i32 = arith.constant 0 : i32
    %c0_i32_0 = arith.constant 0 : i32
    %c0_i32_1 = arith.constant 0 : i32
    return %c0_i32, %c0_i32_0 : i32, i32
  }
  func.func @transform_3(%arg0: i32) -> (i32, i32) {
    %c0_i32 = arith.constant 0 : i32
    %c0_i32_0 = arith.constant 0 : i32
    %c0_i32_1 = arith.constant 0 : i32
    return %c0_i32, %c0_i32_0 : i32, i32
  }
  func.func @transform_4(%arg0: i32) -> (i32, i32) {
    %c0_i32 = arith.constant 0 : i32
    %c0_i32_0 = arith.constant 0 : i32
    return %arg0, %c0_i32 : i32, i32
  }
}

</mosaic_0001>

<bundles_post_ra>
// kernel: hourglass_1_forward.6
= control target key start
LH: loop header
LB: loop body
LE: loop exit
PB: predicated region body
PF: predicated region fallthrough
CT: control target
= control target key end

     0   :  { %vm38_vm0 = vcmask 326656   ;;  %vm294_vm1 = vcmask 31744   ;;  %s612_s1 = inlined_call_operand.vmem [shape: f32[40,4], index: 1, kind: input, shape index: {}]   ;;  %s613_s0 = inlined_call_operand.vmem [shape: f32[128,40], index: 0, kind: input, shape index: {}]   ;;  %s614_s2 = inlined_call_operand.vmem [shape: f32[1,4], index: 2, kind: input, shape index: {}]   ;;  %s615_s3 = inlined_call_operand.vmem [shape: f32[1,4], index: 3, kind: input, shape index: {}]   ;;  %s616_s4 = inlined_call_operand.vmem [shape: f32[128,4], index: 4, kind: output, shape index: {}]  }
   0x1   :  { %v33_v0 = vld [vmem:[%s612_s1] sm:$0xff]  ;;  %v34_v1 = vld [vmem:[%s612_s1 + $0x8] sm:$0xff]  ;;  %v35_v2 = vld [vmem:[%s612_s1 + $0x10] sm:$0xff] }
   0x2   :  { %v388_v3 = vpack.c.bf16 %v34_v1, %v33_v0  ;;  %v36_v4 = vld [vmem:[%s612_s1 + $0x18] sm:$0xff]  ;;  %v17_v5 = vld [vmem:[%s613_s0] sm:$0xff]  ;;  %v18_v9 = vld [vmem:[%s613_s0 + $0x8] sm:$0xff] }
   0x3   :  { %v392_v6 = vpack.c.bf16 %v36_v4, %v35_v2  ;;  %364 = vmatprep.mubr.msk.f32.mxu0 %vm38_vm0, %v17_v5  ;;  %v25_v7 = vld [vmem:[%s613_s0 + $0x40] sm:$0xff]  ;;  %v26_v10 = vld [vmem:[%s613_s0 + $0x48] sm:$0xff]  ;;  %v19_v11 = vld [vmem:[%s613_s0 + $0x10] sm:$0xff] }
   0x4   :  { %389 = vmatprep.subr.bf16.mxu0 %v388_v3  ;;  %396 = vmatprep.subr.bf16.mxu1 %v388_v3  ;;  %v37_v8 = vld [vmem:[%s612_s1 + $0x20] sm:$0xff]  ;;  %v27_v12 = vld [vmem:[%s613_s0 + $0x50] sm:$0xff]  ;;  %v20_v13 = vld [vmem:[%s613_s0 + $0x18] sm:$0xff] }
   0x5   :  { %391 = vmatpush3.bf16.msra.mxu0 %v388_v3  ;;  %399 = vmatpush3.bf16.msra.mxu1 %v388_v3  ;;  %v28_v14 = vld [vmem:[%s613_s0 + $0x58] sm:$0xff]  ;;  %v21_v15 = vld [vmem:[%s613_s0 + $0x20] sm:$0xff]  ;;  %v22_v17 = vld [vmem:[%s613_s0 + $0x28] sm:$0xff] }
   0x6   :  { %393 = vmatprep.subr.bf16.mxu0 %v392_v6  ;;  %397 = vmatprep.subr.bf16.mxu1 %v392_v6  ;;  %v29_v16 = vld [vmem:[%s613_s0 + $0x60] sm:$0xff]  ;;  %v30_v18 = vld [vmem:[%s613_s0 + $0x68] sm:$0xff]  ;;  %v23_v19 = vld [vmem:[%s613_s0 + $0x30] sm:$0xff] }
   0x7   :  { %376 = vmatprep.mubr.msk.f32.mxu1 %vm38_vm0, %v25_v7  ;;  %v31_v20 = vld [vmem:[%s613_s0 + $0x70] sm:$0xff]  ;;  %v24_v21 = vld [vmem:[%s613_s0 + $0x38] sm:$0xff]  ;;  %v509_v23 = vld [vmem:[%s614_s2] ss:$0 sm:$0xff] }
   0x8   :  { %v32_v22 = vld [vmem:[%s613_s0 + $0x78] sm:$0xff]  ;;  %v514_v25 = vld [vmem:[%s615_s3] ss:$0 sm:$0xff] }
   0x9   :  { %395 = vmatpush3.bf16.msra.mxu0 %v392_v6  ;;  %400 = vmatpush3.bf16.msra.mxu1 %v392_v6 }
   0xa   :  { %362 = vmatprep.subr.mxu0 %v37_v8  ;;  %398 = vmatprep.subr.mxu1 %v37_v8 }
   0xd   :  { %363 = vmatpush3.msra.mxu0 %v37_v8  ;;  %401 = vmatpush3.msra.mxu1 %v37_v8 }
   0xe   :  { %365 = vmatmul.mubr.msk.f32.vlgmr.msra.gmra.mrb[0].mxu0 %vm38_vm0, %v18_v9  ;;  %377 = vmatmul.mubr.msk.f32.vlgmr.msra.gmra.mrb[0].mxu1 %vm38_vm0, %v26_v10 }
   0xf   :  { %367 = vmatprep.mubr.msk.f32.mxu0 %vm38_vm0, %v19_v11  ;;  %379 = vmatprep.mubr.msk.f32.mxu1 %vm38_vm0, %v27_v12 }
  0x12   :  { %368 = vmatmul.mubr.msk.f32.gmra.mrb[2].mxu0 %vm38_vm0, %v20_v13  ;;  %380 = vmatmul.mubr.msk.f32.gmra.mrb[2].mxu1 %vm38_vm0, %v28_v14 }
  0x13   :  { %370 = vmatprep.mubr.msk.f32.mxu0 %vm38_vm0, %v21_v15  ;;  %382 = vmatprep.mubr.msk.f32.mxu1 %vm38_vm0, %v29_v16 }
  0x16   :  { %371 = vmatmul.mubr.msk.f32.gmra.mrb[4].mxu0 %vm38_vm0, %v22_v17  ;;  %383 = vmatmul.mubr.msk.f32.gmra.mrb[4].mxu1 %vm38_vm0, %v30_v18 }
  0x17   :  { %373 = vmatprep.mubr.msk.f32.mxu0 %vm38_vm0, %v23_v19  ;;  %385 = vmatprep.mubr.msk.f32.mxu1 %vm38_vm0, %v31_v20 }
  0x1a   :  { %374 = vmatmul.mubr.msk.f32.gmra.mrb[6].mxu0 %vm38_vm0, %v24_v21  ;;  %386 = vmatmul.mubr.msk.f32.gmra.mrb[6].mxu1 %vm38_vm0, %v32_v22 }
  0xe1   :  { %v366_v24 = vpop.f32.mrb[0].mxu0  ;;  %v378_v26 = vpop.f32.mrb[0].mxu1 }
  0xe2   :  { %v240_v27 = vmul.f32 %v366_v24, %v509_v23  ;;  %v248_v28 = vmul.f32 %v378_v26, %v509_v23  ;;  %v153_v29 = vpop.f32.mrb[1].mxu0  ;;  %v193_v30 = vpop.f32.mrb[1].mxu1 }
  0xe3   :  { %v239_v31 = vmul.f32 %v509_v23, %v153_v29  ;;  %v247_v32 = vmul.f32 %v509_v23, %v193_v30 }
  0xe4   :  { %v263_v33 = vadd.f32 %v514_v25, %v240_v27  ;;  %v271_v34 = vadd.f32 %v514_v25, %v248_v28 }
  0xe5   :  { %v262_v35 = vadd.f32 %v514_v25, %v239_v31  ;;  %v270_v36 = vadd.f32 %v514_v25, %v247_v32  ;;  %v369_v37 = vpop.f32.mrb[2].mxu0  ;;  %v381_v38 = vpop.f32.mrb[2].mxu1 }
  0xe6   :  { %v279_v39 = vmax.f32 %v263_v33, 0.0  ;;  %v287_v40 = vmax.f32 %v271_v34, 0.0  ;;  %v242_v41 = vmul.f32 %v369_v37, %v509_v23  ;;  %v250_v42 = vmul.f32 %v381_v38, %v509_v23  ;;  %v163_v43 = vpop.f32.mrb[3].mxu0  ;;  %v203_v44 = vpop.f32.mrb[3].mxu1 }
  0xe7   :  { %v278_v45 = vmax.f32 %v262_v35, 0.0  ;;  %v286_v46 = vmax.f32 %v270_v36, 0.0  ;;  %v241_v47 = vmul.f32 %v509_v23, %v163_v43  ;;  %v249_v48 = vmul.f32 %v509_v23, %v203_v44 }
  0xe8   :  { %296 = vst.msk [vmem:[%s616_s4 + $0x8] sm:$0xff] %vm294_vm1, %v279_v39  ;;  %304 = vst.msk [vmem:[%s616_s4 + $0x48] sm:$0xff] %vm294_vm1, %v287_v40  ;;  %v265_v49 = vadd.f32 %v514_v25, %v242_v41  ;;  %v273_v50 = vadd.f32 %v514_v25, %v250_v42 }
  0xe9   :  { %295 = vst.msk [vmem:[%s616_s4] sm:$0xff] %vm294_vm1, %v278_v45  ;;  %303 = vst.msk [vmem:[%s616_s4 + $0x40] sm:$0xff] %vm294_vm1, %v286_v46  ;;  %v264_v51 = vadd.f32 %v514_v25, %v241_v47  ;;  %v272_v52 = vadd.f32 %v514_v25, %v249_v48  ;;  %v372_v53 = vpop.f32.mrb[4].mxu0  ;;  %v384_v54 = vpop.f32.mrb[4].mxu1 }
  0xea   :  { %v281_v55 = vmax.f32 %v265_v49, 0.0  ;;  %v289_v56 = vmax.f32 %v273_v50, 0.0  ;;  %v244_v57 = vmul.f32 %v372_v53, %v509_v23  ;;  %v252_v58 = vmul.f32 %v384_v54, %v509_v23  ;;  %v173_v59 = vpop.f32.mrb[5].mxu0  ;;  %v213_v60 = vpop.f32.mrb[5].mxu1 }
  0xeb   :  { %v280_v61 = vmax.f32 %v264_v51, 0.0  ;;  %v288_v62 = vmax.f32 %v272_v52, 0.0  ;;  %v243_v63 = vmul.f32 %v509_v23, %v173_v59  ;;  %v251_v0 = vmul.f32 %v509_v23, %v213_v60 }
  0xec   :  { %298 = vst.msk [vmem:[%s616_s4 + $0x18] sm:$0xff] %vm294_vm1, %v281_v55  ;;  %306 = vst.msk [vmem:[%s616_s4 + $0x58] sm:$0xff] %vm294_vm1, %v289_v56  ;;  %v267_v1 = vadd.f32 %v514_v25, %v244_v57  ;;  %v275_v2 = vadd.f32 %v514_v25, %v252_v58 }
  0xed   :  { %297 = vst.msk [vmem:[%s616_s4 + $0x10] sm:$0xff] %vm294_vm1, %v280_v61  ;;  %305 = vst.msk [vmem:[%s616_s4 + $0x50] sm:$0xff] %vm294_vm1, %v288_v62  ;;  %v266_v3 = vadd.f32 %v514_v25, %v243_v63  ;;  %v274_v4 = vadd.f32 %v514_v25, %v251_v0  ;;  %v375_v5 = vpop.f32.mrb[6].mxu0  ;;  %v387_v6 = vpop.f32.mrb[6].mxu1 }
  0xee   :  { %v283_v7 = vmax.f32 %v267_v1, 0.0  ;;  %v291_v8 = vmax.f32 %v275_v2, 0.0  ;;  %v246_v9 = vmul.f32 %v375_v5, %v509_v23  ;;  %v254_v10 = vmul.f32 %v387_v6, %v509_v23  ;;  %v183_v11 = vpop.f32.mrb[7].mxu0  ;;  %v223_v12 = vpop.f32.mrb[7].mxu1 }
  0xef   :  { %v282_v13 = vmax.f32 %v266_v3, 0.0  ;;  %v290_v14 = vmax.f32 %v274_v4, 0.0  ;;  %v245_v15 = vmul.f32 %v509_v23, %v183_v11  ;;  %v253_v16 = vmul.f32 %v509_v23, %v223_v12 }
  0xf0   :  { %300 = vst.msk [vmem:[%s616_s4 + $0x28] sm:$0xff] %vm294_vm1, %v283_v7  ;;  %308 = vst.msk [vmem:[%s616_s4 + $0x68] sm:$0xff] %vm294_vm1, %v291_v8  ;;  %v269_v17 = vadd.f32 %v514_v25, %v246_v9  ;;  %v277_v18 = vadd.f32 %v514_v25, %v254_v10 }
  0xf1   :  { %299 = vst.msk [vmem:[%s616_s4 + $0x20] sm:$0xff] %vm294_vm1, %v282_v13  ;;  %307 = vst.msk [vmem:[%s616_s4 + $0x60] sm:$0xff] %vm294_vm1, %v290_v14  ;;  %v268_v19 = vadd.f32 %v514_v25, %v245_v15  ;;  %v276_v20 = vadd.f32 %v514_v25, %v253_v16 }
  0xf2   :  { %v285_v21 = vmax.f32 %v269_v17, 0.0  ;;  %v293_v22 = vmax.f32 %v277_v18, 0.0 }
  0xf3   :  { %v284_v23 = vmax.f32 %v268_v19, 0.0  ;;  %v292_v24 = vmax.f32 %v276_v20, 0.0 }
  0xf4   :  { %302 = vst.msk [vmem:[%s616_s4 + $0x38] sm:$0xff] %vm294_vm1, %v285_v21  ;;  %310 = vst.msk [vmem:[%s616_s4 + $0x78] sm:$0xff] %vm294_vm1, %v293_v22 }
  0xf5   :  { %301 = vst.msk [vmem:[%s616_s4 + $0x30] sm:$0xff] %vm294_vm1, %v284_v23  ;;  %309 = vst.msk [vmem:[%s616_s4 + $0x70] sm:$0xff] %vm294_vm1, %v292_v24 }

// kernel: hourglass_1_forward.8
= control target key start
LH: loop header
LB: loop body
LE: loop exit
PB: predicated region body
PF: predicated region fallthrough
CT: control target
= control target key end

     0   :  { %vm30_vm0 = vcmask 588800   ;;  %vm154_vm1 = vcmask 64512   ;;  %s318_s1 = inlined_call_operand.vmem [shape: f32[72,8], index: 1, kind: input, shape index: {}]   ;;  %s319_s0 = inlined_call_operand.vmem [shape: f32[32,72], index: 0, kind: input, shape index: {}]   ;;  %s320_s2 = inlined_call_operand.vmem [shape: f32[1,8], index: 2, kind: input, shape index: {}]   ;;  %s321_s3 = inlined_call_operand.vmem [shape: f32[1,8], index: 3, kind: input, shape index: {}]   ;;  %s322_s4 = inlined_call_operand.vmem [shape: f32[32,8], index: 4, kind: output, shape index: {}]  }
   0x1   :  { %v21_v0 = vld [vmem:[%s318_s1] sm:$0xff]  ;;  %v22_v1 = vld [vmem:[%s318_s1 + $0x8] sm:$0xff]  ;;  %v23_v2 = vld [vmem:[%s318_s1 + $0x10] sm:$0xff] }
   0x2   :  { %v206_v3 = vpack.c.bf16 %v22_v1, %v21_v0  ;;  %v24_v4 = vld [vmem:[%s318_s1 + $0x18] sm:$0xff]  ;;  %v25_v6 = vld [vmem:[%s318_s1 + $0x20] sm:$0xff]  ;;  %v26_v7 = vld [vmem:[%s318_s1 + $0x28] sm:$0xff] }
   0x3   :  { %v210_v5 = vpack.c.bf16 %v24_v4, %v23_v2  ;;  %v17_v8 = vld [vmem:[%s319_s0] sm:$0xff]  ;;  %v19_v9 = vld [vmem:[%s319_s0 + $0x10] sm:$0xff]  ;;  %v214_v10 = vpack.c.bf16 %v26_v7, %v25_v6  ;;  %v28_v12 = vld [vmem:[%s318_s1 + $0x38] sm:$0xff] }
   0x4   :  { %207 = vmatprep.subr.bf16.mxu0 %v206_v3  ;;  %222 = vmatprep.subr.bf16.mxu1 %v206_v3  ;;  %v27_v11 = vld [vmem:[%s318_s1 + $0x30] sm:$0xff]  ;;  %v29_v14 = vld [vmem:[%s318_s1 + $0x40] sm:$0xff]  ;;  %v18_v15 = vld [vmem:[%s319_s0 + $0x8] sm:$0xff] }
   0x5   :  { %209 = vmatpush3.bf16.msra.mxu0 %v206_v3  ;;  %227 = vmatpush3.bf16.msra.mxu1 %v206_v3  ;;  %v218_v13 = vpack.c.bf16 %v28_v12, %v27_v11  ;;  %v20_v16 = vld [vmem:[%s319_s0 + $0x18] sm:$0xff]  ;;  %v167_v17 = vld [vmem:[%s320_s2] ss:$0 sm:$0xff] }
   0x6   :  { %211 = vmatprep.subr.bf16.mxu0 %v210_v5  ;;  %223 = vmatprep.subr.bf16.mxu1 %v210_v5  ;;  %v168_v19 = vld [vmem:[%s321_s3] ss:$0 sm:$0xff] }
   0x7   :  { %200 = vmatprep.mubr.msk.f32.mxu0 %vm30_vm0, %v17_v8  ;;  %203 = vmatprep.mubr.msk.f32.mxu1 %vm30_vm0, %v19_v9 }
   0x9   :  { %213 = vmatpush3.bf16.msra.mxu0 %v210_v5  ;;  %228 = vmatpush3.bf16.msra.mxu1 %v210_v5 }
   0xa   :  { %215 = vmatprep.subr.bf16.mxu0 %v214_v10  ;;  %224 = vmatprep.subr.bf16.mxu1 %v214_v10 }
   0xd   :  { %217 = vmatpush3.bf16.msra.mxu0 %v214_v10  ;;  %229 = vmatpush3.bf16.msra.mxu1 %v214_v10 }
   0xe   :  { %219 = vmatprep.subr.bf16.mxu0 %v218_v13  ;;  %225 = vmatprep.subr.bf16.mxu1 %v218_v13 }
  0x11   :  { %221 = vmatpush3.bf16.msra.mxu0 %v218_v13  ;;  %230 = vmatpush3.bf16.msra.mxu1 %v218_v13 }
  0x12   :  { %198 = vmatprep.subr.mxu0 %v29_v14  ;;  %226 = vmatprep.subr.mxu1 %v29_v14 }
  0x15   :  { %199 = vmatpush3.msra.mxu0 %v29_v14  ;;  %231 = vmatpush3.msra.mxu1 %v29_v14 }
  0x16   :  { %201 = vmatmul.mubr.msk.f32.vlgmr.msra.gmra.mrb[0].mxu0 %vm30_vm0, %v18_v15  ;;  %204 = vmatmul.mubr.msk.f32.vlgmr.msra.gmra.mrb[0].mxu1 %vm30_vm0, %v20_v16 }
  0xe9   :  { %v202_v18 = vpop.f32.mrb[0].mxu0  ;;  %v205_v20 = vpop.f32.mrb[0].mxu1 }
  0xea   :  { %v136_v21 = vmul.f32 %v202_v18, %v167_v17  ;;  %v138_v22 = vmul.f32 %v205_v20, %v167_v17  ;;  %v109_v23 = vpop.f32.mrb[1].mxu0  ;;  %v119_v24 = vpop.f32.mrb[1].mxu1 }
  0xeb   :  { %v135_v25 = vmul.f32 %v167_v17, %v109_v23  ;;  %v137_v26 = vmul.f32 %v167_v17, %v119_v24 }
  0xec   :  { %v147_v27 = vadd.f32 %v168_v19, %v136_v21  ;;  %v149_v28 = vadd.f32 %v168_v19, %v138_v22 }
  0xed   :  { %v146_v29 = vadd.f32 %v168_v19, %v135_v25  ;;  %v148_v30 = vadd.f32 %v168_v19, %v137_v26 }
  0xee   :  { %v151_v31 = vmax.f32 %v147_v27, 0.0  ;;  %v153_v32 = vmax.f32 %v149_v28, 0.0 }
  0xef   :  { %v150_v33 = vmax.f32 %v146_v29, 0.0  ;;  %v152_v34 = vmax.f32 %v148_v30, 0.0 }
  0xf0   :  { %156 = vst.msk [vmem:[%s322_s4 + $0x8] sm:$0xff] %vm154_vm1, %v151_v31  ;;  %158 = vst.msk [vmem:[%s322_s4 + $0x18] sm:$0xff] %vm154_vm1, %v153_v32 }
  0xf1   :  { %155 = vst.msk [vmem:[%s322_s4] sm:$0xff] %vm154_vm1, %v150_v33  ;;  %157 = vst.msk [vmem:[%s322_s4 + $0x10] sm:$0xff] %vm154_vm1, %v152_v34 }

// kernel: hourglass_1_forward.10
= control target key start
LH: loop header
LB: loop body
LE: loop exit
PB: predicated region body
PF: predicated region fallthrough
CT: control target
= control target key end

     0   :  { %v408_v0 = vmov 0.0|0.0   ;;  %vm67_vm0 = vcmask 130048   ;;  %vm323_vm1 = vcmask 64512   ;;  %s724_s1 = inlined_call_operand.vmem [shape: f32[144,8], index: 1, kind: input, shape index: {}]   ;;  %s725_s0 = inlined_call_operand.vmem [shape: f32[128,144], index: 0, kind: input, shape index: {}]   ;;  %s726_s2 = inlined_call_operand.vmem [shape: f32[1,8], index: 2, kind: input, shape index: {}]   ;;  %s727_s3 = inlined_call_operand.vmem [shape: f32[1,8], index: 3, kind: input, shape index: {}]   ;;  %s728_s4 = inlined_call_operand.vmem [shape: f32[128,8], index: 4, kind: output, shape index: {}]  }
   0x1   :  { %362 = vmatprep.subr.bf16.mxu0 %v408_v0  ;;  %389 = vmatprep.subr.bf16.mxu1 %v408_v0  ;;  %v49_v1 = vld [vmem:[%s724_s1] sm:$0xff]  ;;  %v50_v2 = vld [vmem:[%s724_s1 + $0x8] sm:$0xff]  ;;  %v51_v3 = vld [vmem:[%s724_s1 + $0x10] sm:$0xff] }
   0x2   :  { %v363_v4 = vpack.c.bf16 %v50_v2, %v49_v1  ;;  %v52_v5 = vld [vmem:[%s724_s1 + $0x18] sm:$0xff]  ;;  %v53_v7 = vld [vmem:[%s724_s1 + $0x20] sm:$0xff]  ;;  %v54_v8 = vld [vmem:[%s724_s1 + $0x28] sm:$0xff] }
   0x3   :  { %v366_v6 = vpack.c.bf16 %v52_v5, %v51_v3  ;;  %v18_v9 = vld [vmem:[%s725_s0 + $0x8] sm:$0xff]  ;;  %v369_v11 = vpack.c.bf16 %v54_v8, %v53_v7  ;;  %v55_v12 = vld [vmem:[%s724_s1 + $0x30] sm:$0xff]  ;;  %v56_v13 = vld [vmem:[%s724_s1 + $0x38] sm:$0xff] }
   0x4   :  { %364 = vmatpush1.bf16.msra.mxu0 %v363_v4  ;;  %398 = vmatpush1.bf16.msra.mxu1 %v363_v4  ;;  %v34_v10 = vld [vmem:[%s725_s0 + $0x88] sm:$0xff]  ;;  %v372_v14 = vpack.c.bf16 %v56_v13, %v55_v12  ;;  %v57_v15 = vld [vmem:[%s724_s1 + $0x40] sm:$0xff]  ;;  %v59_v18 = vld [vmem:[%s724_s1 + $0x50] sm:$0xff] }
   0x5   :  { %365 = vmatprep.subr.bf16.mxu0 %v408_v0  ;;  %390 = vmatprep.subr.bf16.mxu1 %v408_v0  ;;  %v58_v16 = vld [vmem:[%s724_s1 + $0x48] sm:$0xff]  ;;  %v60_v19 = vld [vmem:[%s724_s1 + $0x58] sm:$0xff]  ;;  %v61_v21 = vld [vmem:[%s724_s1 + $0x60] sm:$0xff] }
   0x6   :  { %344 = vmatprep.mubr.msk.f32.mxu0 %vm67_vm0, %v18_v9  ;;  %352 = vmatprep.mubr.msk.f32.mxu1 %vm67_vm0, %v34_v10  ;;  %v375_v17 = vpack.c.bf16 %v58_v16, %v57_v15  ;;  %v378_v20 = vpack.c.bf16 %v60_v19, %v59_v18  ;;  %v62_v22 = vld [vmem:[%s724_s1 + $0x68] sm:$0xff]  ;;  %v63_v24 = vld [vmem:[%s724_s1 + $0x70] sm:$0xff]  ;;  %v64_v25 = vld [vmem:[%s724_s1 + $0x78] sm:$0xff] }
   0x7   :  { %v381_v23 = vpack.c.bf16 %v62_v22, %v61_v21  ;;  %v384_v26 = vpack.c.bf16 %v64_v25, %v63_v24  ;;  %v65_v27 = vld [vmem:[%s724_s1 + $0x80] sm:$0xff]  ;;  %v66_v28 = vld [vmem:[%s724_s1 + $0x88] sm:$0xff]  ;;  %v20_v32 = vld [vmem:[%s725_s0 + $0x18] sm:$0xff] }
   0x8   :  { %367 = vmatpush1.bf16.msra.mxu0 %v366_v6  ;;  %399 = vmatpush1.bf16.msra.mxu1 %v366_v6  ;;  %v387_v29 = vpack.c.bf16 %v66_v28, %v65_v27  ;;  %v17_v30 = vld [vmem:[%s725_s0] sm:$0xff]  ;;  %v36_v33 = vld [vmem:[%s725_s0 + $0x98] sm:$0xff]  ;;  %v19_v34 = vld [vmem:[%s725_s0 + $0x10] sm:$0xff] }
   0x9   :  { %368 = vmatprep.subr.bf16.mxu0 %v408_v0  ;;  %391 = vmatprep.subr.bf16.mxu1 %v408_v0  ;;  %v33_v31 = vld [vmem:[%s725_s0 + $0x80] sm:$0xff]  ;;  %v35_v35 = vld [vmem:[%s725_s0 + $0x90] sm:$0xff]  ;;  %v22_v36 = vld [vmem:[%s725_s0 + $0x28] sm:$0xff] }
   0xa   :  { %v38_v37 = vld [vmem:[%s725_s0 + $0xa8] sm:$0xff]  ;;  %v21_v38 = vld [vmem:[%s725_s0 + $0x20] sm:$0xff]  ;;  %v24_v40 = vld [vmem:[%s725_s0 + $0x38] sm:$0xff] }
   0xb   :  { %v37_v39 = vld [vmem:[%s725_s0 + $0xa0] sm:$0xff]  ;;  %v40_v41 = vld [vmem:[%s725_s0 + $0xb8] sm:$0xff]  ;;  %v23_v42 = vld [vmem:[%s725_s0 + $0x30] sm:$0xff] }
   0xc   :  { %370 = vmatpush1.bf16.msra.mxu0 %v369_v11  ;;  %400 = vmatpush1.bf16.msra.mxu1 %v369_v11  ;;  %v39_v43 = vld [vmem:[%s725_s0 + $0xb0] sm:$0xff]  ;;  %v26_v44 = vld [vmem:[%s725_s0 + $0x48] sm:$0xff]  ;;  %v25_v46 = vld [vmem:[%s725_s0 + $0x40] sm:$0xff] }
   0xd   :  { %371 = vmatprep.subr.bf16.mxu0 %v408_v0  ;;  %392 = vmatprep.subr.bf16.mxu1 %v408_v0  ;;  %v42_v45 = vld [vmem:[%s725_s0 + $0xc8] sm:$0xff]  ;;  %v41_v47 = vld [vmem:[%s725_s0 + $0xc0] sm:$0xff]  ;;  %v28_v48 = vld [vmem:[%s725_s0 + $0x58] sm:$0xff] }
   0xe   :  { %v44_v49 = vld [vmem:[%s725_s0 + $0xd8] sm:$0xff]  ;;  %v27_v50 = vld [vmem:[%s725_s0 + $0x50] sm:$0xff]  ;;  %v30_v52 = vld [vmem:[%s725_s0 + $0x68] sm:$0xff] }
   0xf   :  { %v43_v51 = vld [vmem:[%s725_s0 + $0xd0] sm:$0xff]  ;;  %v46_v53 = vld [vmem:[%s725_s0 + $0xe8] sm:$0xff]  ;;  %v29_v54 = vld [vmem:[%s725_s0 + $0x60] sm:$0xff] }
  0x10   :  { %373 = vmatpush1.bf16.msra.mxu0 %v372_v14  ;;  %401 = vmatpush1.bf16.msra.mxu1 %v372_v14  ;;  %v45_v55 = vld [vmem:[%s725_s0 + $0xe0] sm:$0xff]  ;;  %v32_v56 = vld [vmem:[%s725_s0 + $0x78] sm:$0xff]  ;;  %v31_v58 = vld [vmem:[%s725_s0 + $0x70] sm:$0xff] }
  0x11   :  { %374 = vmatprep.subr.bf16.mxu0 %v408_v0  ;;  %393 = vmatprep.subr.bf16.mxu1 %v408_v0  ;;  %v48_v57 = vld [vmem:[%s725_s0 + $0xf8] sm:$0xff]  ;;  %v47_v59 = vld [vmem:[%s725_s0 + $0xf0] sm:$0xff]  ;;  %v621_v60 = vld [vmem:[%s726_s2] ss:$0 sm:$0xff] }
  0x12   :  { %v626_v62 = vld [vmem:[%s727_s3] ss:$0 sm:$0xff] }
  0x14   :  { %376 = vmatpush1.bf16.msra.mxu0 %v375_v17  ;;  %402 = vmatpush1.bf16.msra.mxu1 %v375_v17 }
  0x15   :  { %377 = vmatprep.subr.bf16.mxu0 %v408_v0  ;;  %394 = vmatprep.subr.bf16.mxu1 %v408_v0 }
  0x18   :  { %379 = vmatpush1.bf16.msra.mxu0 %v378_v20  ;;  %403 = vmatpush1.bf16.msra.mxu1 %v378_v20 }
  0x19   :  { %380 = vmatprep.subr.bf16.mxu0 %v408_v0  ;;  %395 = vmatprep.subr.bf16.mxu1 %v408_v0 }
  0x1c   :  { %382 = vmatpush1.bf16.msra.mxu0 %v381_v23  ;;  %404 = vmatpush1.bf16.msra.mxu1 %v381_v23 }
  0x1d   :  { %383 = vmatprep.subr.bf16.mxu0 %v408_v0  ;;  %396 = vmatprep.subr.bf16.mxu1 %v408_v0 }
  0x20   :  { %385 = vmatpush1.bf16.msra.mxu0 %v384_v26  ;;  %405 = vmatpush1.bf16.msra.mxu1 %v384_v26 }
  0x21   :  { %386 = vmatprep.subr.bf16.mxu0 %v408_v0  ;;  %397 = vmatprep.subr.bf16.mxu1 %v408_v0 }
  0x24   :  { %388 = vmatpush1.bf16.msra.mxu0 %v387_v29  ;;  %406 = vmatpush1.bf16.msra.mxu1 %v387_v29 }
  0x27   :  { %181 = vmatmul.mubr.f32.vlgmr.msra.gmra.mrb[0].mxu0 %v17_v30  ;;  %221 = vmatmul.mubr.f32.vlgmr.msra.gmra.mrb[0].mxu1 %v33_v31 }
  0x28   :  { %345 = vmatprep.mubr.msk.f32.mxu0 %vm67_vm0, %v20_v32  ;;  %353 = vmatprep.mubr.msk.f32.mxu1 %vm67_vm0, %v36_v33 }
  0x2b   :  { %186 = vmatmul.mubr.f32.gmra.mrb[2].mxu0 %v19_v34  ;;  %226 = vmatmul.mubr.f32.gmra.mrb[2].mxu1 %v35_v35 }
  0x2c   :  { %346 = vmatprep.mubr.msk.f32.mxu0 %vm67_vm0, %v22_v36  ;;  %354 = vmatprep.mubr.msk.f32.mxu1 %vm67_vm0, %v38_v37 }
  0x2f   :  { %191 = vmatmul.mubr.f32.gmra.mrb[4].mxu0 %v21_v38  ;;  %231 = vmatmul.mubr.f32.gmra.mrb[4].mxu1 %v37_v39 }
  0x30   :  { %347 = vmatprep.mubr.msk.f32.mxu0 %vm67_vm0, %v24_v40  ;;  %355 = vmatprep.mubr.msk.f32.mxu1 %vm67_vm0, %v40_v41 }
  0x33   :  { %196 = vmatmul.mubr.f32.gmra.mrb[6].mxu0 %v23_v42  ;;  %236 = vmatmul.mubr.f32.gmra.mrb[6].mxu1 %v39_v43 }
  0x34   :  { %348 = vmatprep.mubr.msk.f32.mxu0 %vm67_vm0, %v26_v44  ;;  %356 = vmatprep.mubr.msk.f32.mxu1 %vm67_vm0, %v42_v45 }
  0x37   :  { %201 = vmatmul.mubr.f32.gmra.mrb[8].mxu0 %v25_v46  ;;  %241 = vmatmul.mubr.f32.gmra.mrb[8].mxu1 %v41_v47 }
  0x38   :  { %349 = vmatprep.mubr.msk.f32.mxu0 %vm67_vm0, %v28_v48  ;;  %357 = vmatprep.mubr.msk.f32.mxu1 %vm67_vm0, %v44_v49 }
  0x3b   :  { %206 = vmatmul.mubr.f32.gmra.mrb[10].mxu0 %v27_v50  ;;  %246 = vmatmul.mubr.f32.gmra.mrb[10].mxu1 %v43_v51 }
  0x3c   :  { %350 = vmatprep.mubr.msk.f32.mxu0 %vm67_vm0, %v30_v52  ;;  %358 = vmatprep.mubr.msk.f32.mxu1 %vm67_vm0, %v46_v53 }
  0x3f   :  { %211 = vmatmul.mubr.f32.gmra.mrb[12].mxu0 %v29_v54  ;;  %251 = vmatmul.mubr.f32.gmra.mrb[12].mxu1 %v45_v55 }
  0x40   :  { %351 = vmatprep.mubr.msk.f32.mxu0 %vm67_vm0, %v32_v56  ;;  %359 = vmatprep.mubr.msk.f32.mxu1 %vm67_vm0, %v48_v57 }
  0x43   :  { %216 = vmatmul.mubr.f32.gmra.mrb[14].mxu0 %v31_v58  ;;  %256 = vmatmul.mubr.f32.gmra.mrb[14].mxu1 %v47_v59 }
  0xfa   :  { %v182_v61 = vpop.f32.mrb[0].mxu0  ;;  %v222_v63 = vpop.f32.mrb[0].mxu1 }
  0xfb   :  { %v268_v0 = vmul.f32 %v621_v60, %v182_v61  ;;  %v276_v1 = vmul.f32 %v621_v60, %v222_v63  ;;  %v184_v2 = vpop.f32.mrb[1].mxu0  ;;  %v224_v3 = vpop.f32.mrb[1].mxu1 }
  0xfd   :  { %v291_v4 = vadd.f32 %v626_v62, %v268_v0  ;;  %v299_v5 = vadd.f32 %v626_v62, %v276_v1 }
  0xfe   :  { %v187_v6 = vpop.f32.mrb[2].mxu0  ;;  %v227_v7 = vpop.f32.mrb[2].mxu1 }
  0xff   :  { %v307_v8 = vmax.f32 %v291_v4, 0.0  ;;  %v315_v9 = vmax.f32 %v299_v5, 0.0  ;;  %v269_v10 = vmul.f32 %v621_v60, %v187_v6  ;;  %v277_v11 = vmul.f32 %v621_v60, %v227_v7  ;;  %v189_v12 = vpop.f32.mrb[3].mxu0  ;;  %v229_v13 = vpop.f32.mrb[3].mxu1 }
 0x101   :  { %324 = vst.msk [vmem:[%s728_s4] sm:$0xff] %vm323_vm1, %v307_v8  ;;  %332 = vst.msk [vmem:[%s728_s4 + $0x40] sm:$0xff] %vm323_vm1, %v315_v9  ;;  %v292_v14 = vadd.f32 %v626_v62, %v269_v10  ;;  %v300_v15 = vadd.f32 %v626_v62, %v277_v11 }
 0x102   :  { %v192_v16 = vpop.f32.mrb[4].mxu0  ;;  %v232_v17 = vpop.f32.mrb[4].mxu1 }
 0x103   :  { %v308_v18 = vmax.f32 %v292_v14, 0.0  ;;  %v316_v19 = vmax.f32 %v300_v15, 0.0  ;;  %v270_v20 = vmul.f32 %v621_v60, %v192_v16  ;;  %v278_v21 = vmul.f32 %v621_v60, %v232_v17  ;;  %v194_v22 = vpop.f32.mrb[5].mxu0  ;;  %v234_v23 = vpop.f32.mrb[5].mxu1 }
 0x105   :  { %325 = vst.msk [vmem:[%s728_s4 + $0x8] sm:$0xff] %vm323_vm1, %v308_v18  ;;  %333 = vst.msk [vmem:[%s728_s4 + $0x48] sm:$0xff] %vm323_vm1, %v316_v19  ;;  %v293_v24 = vadd.f32 %v626_v62, %v270_v20  ;;  %v301_v25 = vadd.f32 %v626_v62, %v278_v21 }
 0x106   :  { %v197_v26 = vpop.f32.mrb[6].mxu0  ;;  %v237_v27 = vpop.f32.mrb[6].mxu1 }
 0x107   :  { %v309_v28 = vmax.f32 %v293_v24, 0.0  ;;  %v317_v29 = vmax.f32 %v301_v25, 0.0  ;;  %v271_v30 = vmul.f32 %v621_v60, %v197_v26  ;;  %v279_v31 = vmul.f32 %v621_v60, %v237_v27  ;;  %v199_v32 = vpop.f32.mrb[7].mxu0  ;;  %v239_v33 = vpop.f32.mrb[7].mxu1 }
 0x109   :  { %326 = vst.msk [vmem:[%s728_s4 + $0x10] sm:$0xff] %vm323_vm1, %v309_v28  ;;  %334 = vst.msk [vmem:[%s728_s4 + $0x50] sm:$0xff] %vm323_vm1, %v317_v29  ;;  %v294_v34 = vadd.f32 %v626_v62, %v271_v30  ;;  %v302_v35 = vadd.f32 %v626_v62, %v279_v31 }
 0x10a   :  { %v202_v36 = vpop.f32.mrb[8].mxu0  ;;  %v242_v37 = vpop.f32.mrb[8].mxu1 }
 0x10b   :  { %v310_v38 = vmax.f32 %v294_v34, 0.0  ;;  %v318_v39 = vmax.f32 %v302_v35, 0.0  ;;  %v272_v40 = vmul.f32 %v621_v60, %v202_v36  ;;  %v280_v41 = vmul.f32 %v621_v60, %v242_v37  ;;  %v204_v42 = vpop.f32.mrb[9].mxu0  ;;  %v244_v43 = vpop.f32.mrb[9].mxu1 }
 0x10d   :  { %327 = vst.msk [vmem:[%s728_s4 + $0x18] sm:$0xff] %vm323_vm1, %v310_v38  ;;  %335 = vst.msk [vmem:[%s728_s4 + $0x58] sm:$0xff] %vm323_vm1, %v318_v39  ;;  %v295_v44 = vadd.f32 %v626_v62, %v272_v40  ;;  %v303_v45 = vadd.f32 %v626_v62, %v280_v41 }
 0x10e   :  { %v207_v46 = vpop.f32.mrb[10].mxu0  ;;  %v247_v47 = vpop.f32.mrb[10].mxu1 }
 0x10f   :  { %v311_v48 = vmax.f32 %v295_v44, 0.0  ;;  %v319_v49 = vmax.f32 %v303_v45, 0.0  ;;  %v273_v50 = vmul.f32 %v621_v60, %v207_v46  ;;  %v281_v51 = vmul.f32 %v621_v60, %v247_v47  ;;  %v209_v52 = vpop.f32.mrb[11].mxu0  ;;  %v249_v53 = vpop.f32.mrb[11].mxu1 }
 0x111   :  { %328 = vst.msk [vmem:[%s728_s4 + $0x20] sm:$0xff] %vm323_vm1, %v311_v48  ;;  %336 = vst.msk [vmem:[%s728_s4 + $0x60] sm:$0xff] %vm323_vm1, %v319_v49  ;;  %v296_v54 = vadd.f32 %v626_v62, %v273_v50  ;;  %v304_v55 = vadd.f32 %v626_v62, %v281_v51 }
 0x112   :  { %v212_v56 = vpop.f32.mrb[12].mxu0  ;;  %v252_v57 = vpop.f32.mrb[12].mxu1 }
 0x113   :  { %v312_v58 = vmax.f32 %v296_v54, 0.0  ;;  %v320_v59 = vmax.f32 %v304_v55, 0.0  ;;  %v274_v61 = vmul.f32 %v621_v60, %v212_v56  ;;  %v282_v63 = vmul.f32 %v621_v60, %v252_v57  ;;  %v214_v0 = vpop.f32.mrb[13].mxu0  ;;  %v254_v1 = vpop.f32.mrb[13].mxu1 }
 0x115   :  { %329 = vst.msk [vmem:[%s728_s4 + $0x28] sm:$0xff] %vm323_vm1, %v312_v58  ;;  %337 = vst.msk [vmem:[%s728_s4 + $0x68] sm:$0xff] %vm323_vm1, %v320_v59  ;;  %v297_v2 = vadd.f32 %v626_v62, %v274_v61  ;;  %v305_v3 = vadd.f32 %v626_v62, %v282_v63 }
 0x116   :  { %v217_v4 = vpop.f32.mrb[14].mxu0  ;;  %v257_v5 = vpop.f32.mrb[14].mxu1 }
 0x117   :  { %v313_v6 = vmax.f32 %v297_v2, 0.0  ;;  %v321_v7 = vmax.f32 %v305_v3, 0.0  ;;  %v275_v8 = vmul.f32 %v621_v60, %v217_v4  ;;  %v283_v9 = vmul.f32 %v621_v60, %v257_v5  ;;  %v219_v10 = vpop.f32.mrb[15].mxu0  ;;  %v259_v11 = vpop.f32.mrb[15].mxu1 }
 0x119   :  { %330 = vst.msk [vmem:[%s728_s4 + $0x30] sm:$0xff] %vm323_vm1, %v313_v6  ;;  %338 = vst.msk [vmem:[%s728_s4 + $0x70] sm:$0xff] %vm323_vm1, %v321_v7  ;;  %v298_v12 = vadd.f32 %v626_v62, %v275_v8  ;;  %v306_v13 = vadd.f32 %v626_v62, %v283_v9 }
 0x11b   :  { %v314_v14 = vmax.f32 %v298_v12, 0.0  ;;  %v322_v15 = vmax.f32 %v306_v13, 0.0 }
 0x11d   :  { %331 = vst.msk [vmem:[%s728_s4 + $0x38] sm:$0xff] %vm323_vm1, %v314_v14  ;;  %339 = vst.msk [vmem:[%s728_s4 + $0x78] sm:$0xff] %vm323_vm1, %v322_v15 }

// kernel: hourglass_1_forward.11
= control target key start
LH: loop header
LB: loop body
LE: loop exit
PB: predicated region body
PF: predicated region fallthrough
CT: control target
= control target key end

     0   :  { %vm90_vm0 = vcmask 588800   ;;  %vm810_vm1 = vcmask 31744   ;;  %s1860_s1 = inlined_call_operand.vmem [shape: f32[72,4], index: 1, kind: input, shape index: {}]   ;;  %s1861_s0 = inlined_call_operand.vmem [shape: f32[512,72], index: 0, kind: input, shape index: {}]   ;;  %s1862_s2 = inlined_call_operand.vmem [shape: f32[1,4], index: 2, kind: input, shape index: {}]   ;;  %s1863_s3 = inlined_call_operand.vmem [shape: f32[1,4], index: 3, kind: input, shape index: {}]   ;;  %s1864_s4 = inlined_call_operand.vmem [shape: f32[512,4], index: 4, kind: output, shape index: {}]  }
   0x1   :  { %v81_v0 = vld [vmem:[%s1860_s1] sm:$0xff]  ;;  %v82_v1 = vld [vmem:[%s1860_s1 + $0x8] sm:$0xff]  ;;  %v83_v2 = vld [vmem:[%s1860_s1 + $0x10] sm:$0xff] }
   0x2   :  { %v1132_v3 = vpack.c.bf16 %v82_v1, %v81_v0  ;;  %v84_v4 = vld [vmem:[%s1860_s1 + $0x18] sm:$0xff]  ;;  %v85_v6 = vld [vmem:[%s1860_s1 + $0x20] sm:$0xff]  ;;  %v86_v7 = vld [vmem:[%s1860_s1 + $0x28] sm:$0xff] }
   0x3   :  { %v1136_v5 = vpack.c.bf16 %v84_v4, %v83_v2  ;;  %v17_v8 = vld [vmem:[%s1861_s0] sm:$0xff]  ;;  %v1140_v10 = vpack.c.bf16 %v86_v7, %v85_v6  ;;  %v87_v11 = vld [vmem:[%s1860_s1 + $0x30] sm:$0xff]  ;;  %v88_v12 = vld [vmem:[%s1860_s1 + $0x38] sm:$0xff] }
   0x4   :  { %1133 = vmatprep.subr.bf16.mxu0 %v1132_v3  ;;  %1148 = vmatprep.subr.bf16.mxu1 %v1132_v3  ;;  %v49_v9 = vld [vmem:[%s1861_s0 + $0x100] sm:$0xff]  ;;  %v1144_v13 = vpack.c.bf16 %v88_v12, %v87_v11  ;;  %v18_v15 = vld [vmem:[%s1861_s0 + $0x8] sm:$0xff]  ;;  %v19_v17 = vld [vmem:[%s1861_s0 + $0x10] sm:$0xff] }
   0x5   :  { %1135 = vmatpush3.bf16.msra.mxu0 %v1132_v3  ;;  %1153 = vmatpush3.bf16.msra.mxu1 %v1132_v3  ;;  %v89_v14 = vld [vmem:[%s1860_s1 + $0x40] sm:$0xff]  ;;  %v50_v16 = vld [vmem:[%s1861_s0 + $0x108] sm:$0xff]  ;;  %v51_v18 = vld [vmem:[%s1861_s0 + $0x110] sm:$0xff] }
   0x6   :  { %1137 = vmatprep.subr.bf16.mxu0 %v1136_v5  ;;  %1149 = vmatprep.subr.bf16.mxu1 %v1136_v5  ;;  %v20_v19 = vld [vmem:[%s1861_s0 + $0x18] sm:$0xff]  ;;  %v21_v21 = vld [vmem:[%s1861_s0 + $0x20] sm:$0xff]  ;;  %v22_v23 = vld [vmem:[%s1861_s0 + $0x28] sm:$0xff] }
   0x7   :  { %1036 = vmatprep.mubr.msk.f32.mxu0 %vm90_vm0, %v17_v8  ;;  %1084 = vmatprep.mubr.msk.f32.mxu1 %vm90_vm0, %v49_v9  ;;  %v52_v20 = vld [vmem:[%s1861_s0 + $0x118] sm:$0xff]  ;;  %v53_v22 = vld [vmem:[%s1861_s0 + $0x120] sm:$0xff]  ;;  %v54_v24 = vld [vmem:[%s1861_s0 + $0x128] sm:$0xff] }
   0x8   :  { %v23_v25 = vld [vmem:[%s1861_s0 + $0x30] sm:$0xff]  ;;  %v24_v27 = vld [vmem:[%s1861_s0 + $0x38] sm:$0xff]  ;;  %v25_v29 = vld [vmem:[%s1861_s0 + $0x40] sm:$0xff] }
   0x9   :  { %1139 = vmatpush3.bf16.msra.mxu0 %v1136_v5  ;;  %1154 = vmatpush3.bf16.msra.mxu1 %v1136_v5  ;;  %v55_v26 = vld [vmem:[%s1861_s0 + $0x130] sm:$0xff]  ;;  %v56_v28 = vld [vmem:[%s1861_s0 + $0x138] sm:$0xff]  ;;  %v57_v30 = vld [vmem:[%s1861_s0 + $0x140] sm:$0xff] }
   0xa   :  { %1141 = vmatprep.subr.bf16.mxu0 %v1140_v10  ;;  %1150 = vmatprep.subr.bf16.mxu1 %v1140_v10  ;;  %v26_v31 = vld [vmem:[%s1861_s0 + $0x48] sm:$0xff]  ;;  %v27_v33 = vld [vmem:[%s1861_s0 + $0x50] sm:$0xff]  ;;  %v28_v35 = vld [vmem:[%s1861_s0 + $0x58] sm:$0xff] }
   0xb   :  { %v58_v32 = vld [vmem:[%s1861_s0 + $0x148] sm:$0xff]  ;;  %v59_v34 = vld [vmem:[%s1861_s0 + $0x150] sm:$0xff]  ;;  %v60_v36 = vld [vmem:[%s1861_s0 + $0x158] sm:$0xff] }
   0xc   :  { %v29_v37 = vld [vmem:[%s1861_s0 + $0x60] sm:$0xff]  ;;  %v30_v39 = vld [vmem:[%s1861_s0 + $0x68] sm:$0xff]  ;;  %v31_v41 = vld [vmem:[%s1861_s0 + $0x70] sm:$0xff] }
   0xd   :  { %1143 = vmatpush3.bf16.msra.mxu0 %v1140_v10  ;;  %1155 = vmatpush3.bf16.msra.mxu1 %v1140_v10  ;;  %v61_v38 = vld [vmem:[%s1861_s0 + $0x160] sm:$0xff]  ;;  %v62_v40 = vld [vmem:[%s1861_s0 + $0x168] sm:$0xff]  ;;  %v63_v42 = vld [vmem:[%s1861_s0 + $0x170] sm:$0xff] }
   0xe   :  { %1145 = vmatprep.subr.bf16.mxu0 %v1144_v13  ;;  %1151 = vmatprep.subr.bf16.mxu1 %v1144_v13  ;;  %v32_v43 = vld [vmem:[%s1861_s0 + $0x78] sm:$0xff]  ;;  %v33_v45 = vld [vmem:[%s1861_s0 + $0x80] sm:$0xff]  ;;  %v34_v47 = vld [vmem:[%s1861_s0 + $0x88] sm:$0xff] }
   0xf   :  { %v64_v44 = vld [vmem:[%s1861_s0 + $0x178] sm:$0xff]  ;;  %v65_v46 = vld [vmem:[%s1861_s0 + $0x180] sm:$0xff]  ;;  %v66_v48 = vld [vmem:[%s1861_s0 + $0x188] sm:$0xff] }
  0x10   :  { %v35_v49 = vld [vmem:[%s1861_s0 + $0x90] sm:$0xff]  ;;  %v36_v51 = vld [vmem:[%s1861_s0 + $0x98] sm:$0xff]  ;;  %v37_v53 = vld [vmem:[%s1861_s0 + $0xa0] sm:$0xff] }
  0x11   :  { %1147 = vmatpush3.bf16.msra.mxu0 %v1144_v13  ;;  %1156 = vmatpush3.bf16.msra.mxu1 %v1144_v13  ;;  %v67_v50 = vld [vmem:[%s1861_s0 + $0x190] sm:$0xff]  ;;  %v68_v52 = vld [vmem:[%s1861_s0 + $0x198] sm:$0xff]  ;;  %v69_v54 = vld [vmem:[%s1861_s0 + $0x1a0] sm:$0xff] }
  0x12   :  { %1034 = vmatprep.subr.mxu0 %v89_v14  ;;  %1152 = vmatprep.subr.mxu1 %v89_v14  ;;  %v38_v55 = vld [vmem:[%s1861_s0 + $0xa8] sm:$0xff]  ;;  %v39_v57 = vld [vmem:[%s1861_s0 + $0xb0] sm:$0xff]  ;;  %v40_v59 = vld [vmem:[%s1861_s0 + $0xb8] sm:$0xff] }
  0x13   :  { %v70_v56 = vld [vmem:[%s1861_s0 + $0x1a8] sm:$0xff]  ;;  %v71_v58 = vld [vmem:[%s1861_s0 + $0x1b0] sm:$0xff]  ;;  %v72_v60 = vld [vmem:[%s1861_s0 + $0x1b8] sm:$0xff] }
  0x14   :  { %v41_v61 = vld [vmem:[%s1861_s0 + $0xc0] sm:$0xff]  ;;  %v42_v63 = vld [vmem:[%s1861_s0 + $0xc8] sm:$0xff]  ;;  %v43_v1 = vld [vmem:[%s1861_s0 + $0xd0] sm:$0xff] }
  0x15   :  { %1035 = vmatpush3.msra.mxu0 %v89_v14  ;;  %1157 = vmatpush3.msra.mxu1 %v89_v14  ;;  %v73_v62 = vld [vmem:[%s1861_s0 + $0x1c0] sm:$0xff]  ;;  %v74_v0 = vld [vmem:[%s1861_s0 + $0x1c8] sm:$0xff]  ;;  %v75_v2 = vld [vmem:[%s1861_s0 + $0x1d0] sm:$0xff] }
  0x16   :  { %1037 = vmatmul.mubr.msk.f32.vlgmr.msra.gmra.mrb[0].mxu0 %vm90_vm0, %v18_v15  ;;  %1085 = vmatmul.mubr.msk.f32.vlgmr.msra.gmra.mrb[0].mxu1 %vm90_vm0, %v50_v16  ;;  %v44_v3 = vld [vmem:[%s1861_s0 + $0xd8] sm:$0xff]  ;;  %v45_v5 = vld [vmem:[%s1861_s0 + $0xe0] sm:$0xff]  ;;  %v46_v7 = vld [vmem:[%s1861_s0 + $0xe8] sm:$0xff] }
  0x17   :  { %1039 = vmatprep.mubr.msk.f32.mxu0 %vm90_vm0, %v19_v17  ;;  %1087 = vmatprep.mubr.msk.f32.mxu1 %vm90_vm0, %v51_v18  ;;  %v76_v4 = vld [vmem:[%s1861_s0 + $0x1d8] sm:$0xff]  ;;  %v77_v6 = vld [vmem:[%s1861_s0 + $0x1e0] sm:$0xff]  ;;  %v78_v8 = vld [vmem:[%s1861_s0 + $0x1e8] sm:$0xff] }
  0x18   :  { %v47_v9 = vld [vmem:[%s1861_s0 + $0xf0] sm:$0xff]  ;;  %v48_v11 = vld [vmem:[%s1861_s0 + $0xf8] sm:$0xff]  ;;  %v1469_v13 = vld [vmem:[%s1862_s2] ss:$0 sm:$0xff] }
  0x19   :  { %v79_v10 = vld [vmem:[%s1861_s0 + $0x1f0] sm:$0xff]  ;;  %v80_v12 = vld [vmem:[%s1861_s0 + $0x1f8] sm:$0xff]  ;;  %v1474_v15 = vld [vmem:[%s1863_s3] ss:$0 sm:$0xff] }
  0x1a   :  { %1040 = vmatmul.mubr.msk.f32.gmra.mrb[2].mxu0 %vm90_vm0, %v20_v19  ;;  %1088 = vmatmul.mubr.msk.f32.gmra.mrb[2].mxu1 %vm90_vm0, %v52_v20 }
  0x1b   :  { %1042 = vmatprep.mubr.msk.f32.mxu0 %vm90_vm0, %v21_v21  ;;  %1090 = vmatprep.mubr.msk.f32.mxu1 %vm90_vm0, %v53_v22 }
  0x1e   :  { %1043 = vmatmul.mubr.msk.f32.gmra.mrb[4].mxu0 %vm90_vm0, %v22_v23  ;;  %1091 = vmatmul.mubr.msk.f32.gmra.mrb[4].mxu1 %vm90_vm0, %v54_v24 }
  0x1f   :  { %1045 = vmatprep.mubr.msk.f32.mxu0 %vm90_vm0, %v23_v25  ;;  %1093 = vmatprep.mubr.msk.f32.mxu1 %vm90_vm0, %v55_v26 }
  0x22   :  { %1046 = vmatmul.mubr.msk.f32.gmra.mrb[6].mxu0 %vm90_vm0, %v24_v27  ;;  %1094 = vmatmul.mubr.msk.f32.gmra.mrb[6].mxu1 %vm90_vm0, %v56_v28 }
  0x23   :  { %1048 = vmatprep.mubr.msk.f32.mxu0 %vm90_vm0, %v25_v29  ;;  %1096 = vmatprep.mubr.msk.f32.mxu1 %vm90_vm0, %v57_v30 }
  0x26   :  { %1049 = vmatmul.mubr.msk.f32.gmra.mrb[8].mxu0 %vm90_vm0, %v26_v31  ;;  %1097 = vmatmul.mubr.msk.f32.gmra.mrb[8].mxu1 %vm90_vm0, %v58_v32 }
  0x27   :  { %1051 = vmatprep.mubr.msk.f32.mxu0 %vm90_vm0, %v27_v33  ;;  %1099 = vmatprep.mubr.msk.f32.mxu1 %vm90_vm0, %v59_v34 }
  0x2a   :  { %1052 = vmatmul.mubr.msk.f32.gmra.mrb[10].mxu0 %vm90_vm0, %v28_v35  ;;  %1100 = vmatmul.mubr.msk.f32.gmra.mrb[10].mxu1 %vm90_vm0, %v60_v36 }
  0x2b   :  { %1054 = vmatprep.mubr.msk.f32.mxu0 %vm90_vm0, %v29_v37  ;;  %1102 = vmatprep.mubr.msk.f32.mxu1 %vm90_vm0, %v61_v38 }
  0x2e   :  { %1055 = vmatmul.mubr.msk.f32.gmra.mrb[12].mxu0 %vm90_vm0, %v30_v39  ;;  %1103 = vmatmul.mubr.msk.f32.gmra.mrb[12].mxu1 %vm90_vm0, %v62_v40 }
  0x2f   :  { %1057 = vmatprep.mubr.msk.f32.mxu0 %vm90_vm0, %v31_v41  ;;  %1105 = vmatprep.mubr.msk.f32.mxu1 %vm90_vm0, %v63_v42 }
  0x32   :  { %1058 = vmatmul.mubr.msk.f32.gmra.mrb[14].mxu0 %vm90_vm0, %v32_v43  ;;  %1106 = vmatmul.mubr.msk.f32.gmra.mrb[14].mxu1 %vm90_vm0, %v64_v44 }
  0x33   :  { %1060 = vmatprep.mubr.msk.f32.mxu0 %vm90_vm0, %v33_v45  ;;  %1108 = vmatprep.mubr.msk.f32.mxu1 %vm90_vm0, %v65_v46 }
  0x36   :  { %1061 = vmatmul.mubr.msk.f32.gmra.mrb[16].mxu0 %vm90_vm0, %v34_v47  ;;  %1109 = vmatmul.mubr.msk.f32.gmra.mrb[16].mxu1 %vm90_vm0, %v66_v48 }
  0x37   :  { %1063 = vmatprep.mubr.msk.f32.mxu0 %vm90_vm0, %v35_v49  ;;  %1111 = vmatprep.mubr.msk.f32.mxu1 %vm90_vm0, %v67_v50 }
  0x3a   :  { %1064 = vmatmul.mubr.msk.f32.gmra.mrb[18].mxu0 %vm90_vm0, %v36_v51  ;;  %1112 = vmatmul.mubr.msk.f32.gmra.mrb[18].mxu1 %vm90_vm0, %v68_v52 }
  0x3b   :  { %1066 = vmatprep.mubr.msk.f32.mxu0 %vm90_vm0, %v37_v53  ;;  %1114 = vmatprep.mubr.msk.f32.mxu1 %vm90_vm0, %v69_v54 }
  0x3e   :  { %1067 = vmatmul.mubr.msk.f32.gmra.mrb[20].mxu0 %vm90_vm0, %v38_v55  ;;  %1115 = vmatmul.mubr.msk.f32.gmra.mrb[20].mxu1 %vm90_vm0, %v70_v56 }
  0x3f   :  { %1069 = vmatprep.mubr.msk.f32.mxu0 %vm90_vm0, %v39_v57  ;;  %1117 = vmatprep.mubr.msk.f32.mxu1 %vm90_vm0, %v71_v58 }
  0x42   :  { %1070 = vmatmul.mubr.msk.f32.gmra.mrb[22].mxu0 %vm90_vm0, %v40_v59  ;;  %1118 = vmatmul.mubr.msk.f32.gmra.mrb[22].mxu1 %vm90_vm0, %v72_v60 }
  0x43   :  { %1072 = vmatprep.mubr.msk.f32.mxu0 %vm90_vm0, %v41_v61  ;;  %1120 = vmatprep.mubr.msk.f32.mxu1 %vm90_vm0, %v73_v62 }
  0x46   :  { %1073 = vmatmul.mubr.msk.f32.gmra.mrb[24].mxu0 %vm90_vm0, %v42_v63  ;;  %1121 = vmatmul.mubr.msk.f32.gmra.mrb[24].mxu1 %vm90_vm0, %v74_v0 }
  0x47   :  { %1075 = vmatprep.mubr.msk.f32.mxu0 %vm90_vm0, %v43_v1  ;;  %1123 = vmatprep.mubr.msk.f32.mxu1 %vm90_vm0, %v75_v2 }
  0x4a   :  { %1076 = vmatmul.mubr.msk.f32.gmra.mrb[26].mxu0 %vm90_vm0, %v44_v3  ;;  %1124 = vmatmul.mubr.msk.f32.gmra.mrb[26].mxu1 %vm90_vm0, %v76_v4 }
  0x4b   :  { %1078 = vmatprep.mubr.msk.f32.mxu0 %vm90_vm0, %v45_v5  ;;  %1126 = vmatprep.mubr.msk.f32.mxu1 %vm90_vm0, %v77_v6 }
  0x4e   :  { %1079 = vmatmul.mubr.msk.f32.gmra.mrb[28].mxu0 %vm90_vm0, %v46_v7  ;;  %1127 = vmatmul.mubr.msk.f32.gmra.mrb[28].mxu1 %vm90_vm0, %v78_v8 }
  0x4f   :  { %1081 = vmatprep.mubr.msk.f32.mxu0 %vm90_vm0, %v47_v9  ;;  %1129 = vmatprep.mubr.msk.f32.mxu1 %vm90_vm0, %v79_v10 }
  0x52   :  { %1082 = vmatmul.mubr.msk.f32.gmra.mrb[30].mxu0 %vm90_vm0, %v48_v11  ;;  %1130 = vmatmul.mubr.msk.f32.gmra.mrb[30].mxu1 %vm90_vm0, %v80_v12 }
  0xe9   :  { %v1038_v14 = vpop.f32.mrb[0].mxu0  ;;  %v1086_v16 = vpop.f32.mrb[0].mxu1 }
  0xea   :  { %v676_v17 = vmul.f32 %v1038_v14, %v1469_v13  ;;  %v708_v18 = vmul.f32 %v1086_v16, %v1469_v13  ;;  %v349_v19 = vpop.f32.mrb[1].mxu0  ;;  %v509_v20 = vpop.f32.mrb[1].mxu1 }
  0xeb   :  { %v675_v21 = vmul.f32 %v1469_v13, %v349_v19  ;;  %v707_v22 = vmul.f32 %v1469_v13, %v509_v20 }
  0xec   :  { %v747_v23 = vadd.f32 %v1474_v15, %v676_v17  ;;  %v779_v24 = vadd.f32 %v1474_v15, %v708_v18 }
  0xed   :  { %v746_v25 = vadd.f32 %v1474_v15, %v675_v21  ;;  %v778_v26 = vadd.f32 %v1474_v15, %v707_v22  ;;  %v1041_v27 = vpop.f32.mrb[2].mxu0  ;;  %v1089_v28 = vpop.f32.mrb[2].mxu1 }
  0xee   :  { %812 = vst.msk [vmem:[%s1864_s4 + $0x8] sm:$0xff] %vm810_vm1, %v747_v23  ;;  %844 = vst.msk [vmem:[%s1864_s4 + $0x108] sm:$0xff] %vm810_vm1, %v779_v24  ;;  %v678_v29 = vmul.f32 %v1041_v27, %v1469_v13  ;;  %v710_v30 = vmul.f32 %v1089_v28, %v1469_v13  ;;  %v359_v31 = vpop.f32.mrb[3].mxu0  ;;  %v519_v32 = vpop.f32.mrb[3].mxu1 }
  0xef   :  { %811 = vst.msk [vmem:[%s1864_s4] sm:$0xff] %vm810_vm1, %v746_v25  ;;  %843 = vst.msk [vmem:[%s1864_s4 + $0x100] sm:$0xff] %vm810_vm1, %v778_v26  ;;  %v677_v33 = vmul.f32 %v1469_v13, %v359_v31  ;;  %v709_v34 = vmul.f32 %v1469_v13, %v519_v32 }
  0xf0   :  { %v749_v35 = vadd.f32 %v1474_v15, %v678_v29  ;;  %v781_v36 = vadd.f32 %v1474_v15, %v710_v30 }
  0xf1   :  { %v748_v37 = vadd.f32 %v1474_v15, %v677_v33  ;;  %v780_v38 = vadd.f32 %v1474_v15, %v709_v34  ;;  %v1044_v39 = vpop.f32.mrb[4].mxu0  ;;  %v1092_v40 = vpop.f32.mrb[4].mxu1 }
  0xf2   :  { %814 = vst.msk [vmem:[%s1864_s4 + $0x18] sm:$0xff] %vm810_vm1, %v749_v35  ;;  %846 = vst.msk [vmem:[%s1864_s4 + $0x118] sm:$0xff] %vm810_vm1, %v781_v36  ;;  %v680_v41 = vmul.f32 %v1044_v39, %v1469_v13  ;;  %v712_v42 = vmul.f32 %v1092_v40, %v1469_v13  ;;  %v369_v43 = vpop.f32.mrb[5].mxu0  ;;  %v529_v44 = vpop.f32.mrb[5].mxu1 }
  0xf3   :  { %813 = vst.msk [vmem:[%s1864_s4 + $0x10] sm:$0xff] %vm810_vm1, %v748_v37  ;;  %845 = vst.msk [vmem:[%s1864_s4 + $0x110] sm:$0xff] %vm810_vm1, %v780_v38  ;;  %v679_v45 = vmul.f32 %v1469_v13, %v369_v43  ;;  %v711_v46 = vmul.f32 %v1469_v13, %v529_v44 }
  0xf4   :  { %v751_v47 = vadd.f32 %v1474_v15, %v680_v41  ;;  %v783_v48 = vadd.f32 %v1474_v15, %v712_v42 }
  0xf5   :  { %v750_v49 = vadd.f32 %v1474_v15, %v679_v45  ;;  %v782_v50 = vadd.f32 %v1474_v15, %v711_v46  ;;  %v1047_v51 = vpop.f32.mrb[6].mxu0  ;;  %v1095_v52 = vpop.f32.mrb[6].mxu1 }
  0xf6   :  { %816 = vst.msk [vmem:[%s1864_s4 + $0x28] sm:$0xff] %vm810_vm1, %v751_v47  ;;  %848 = vst.msk [vmem:[%s1864_s4 + $0x128] sm:$0xff] %vm810_vm1, %v783_v48  ;;  %v682_v53 = vmul.f32 %v1047_v51, %v1469_v13  ;;  %v714_v54 = vmul.f32 %v1095_v52, %v1469_v13  ;;  %v379_v55 = vpop.f32.mrb[7].mxu0  ;;  %v539_v56 = vpop.f32.mrb[7].mxu1 }
  0xf7   :  { %815 = vst.msk [vmem:[%s1864_s4 + $0x20] sm:$0xff] %vm810_vm1, %v750_v49  ;;  %847 = vst.msk [vmem:[%s1864_s4 + $0x120] sm:$0xff] %vm810_vm1, %v782_v50  ;;  %v681_v57 = vmul.f32 %v1469_v13, %v379_v55  ;;  %v713_v58 = vmul.f32 %v1469_v13, %v539_v56 }
  0xf8   :  { %v753_v59 = vadd.f32 %v1474_v15, %v682_v53  ;;  %v785_v60 = vadd.f32 %v1474_v15, %v714_v54 }
  0xf9   :  { %v752_v61 = vadd.f32 %v1474_v15, %v681_v57  ;;  %v784_v62 = vadd.f32 %v1474_v15, %v713_v58  ;;  %v1050_v63 = vpop.f32.mrb[8].mxu0  ;;  %v1098_v0 = vpop.f32.mrb[8].mxu1 }
  0xfa   :  { %818 = vst.msk [vmem:[%s1864_s4 + $0x38] sm:$0xff] %vm810_vm1, %v753_v59  ;;  %850 = vst.msk [vmem:[%s1864_s4 + $0x138] sm:$0xff] %vm810_vm1, %v785_v60  ;;  %v684_v1 = vmul.f32 %v1050_v63, %v1469_v13  ;;  %v716_v2 = vmul.f32 %v1098_v0, %v1469_v13  ;;  %v389_v3 = vpop.f32.mrb[9].mxu0  ;;  %v549_v4 = vpop.f32.mrb[9].mxu1 }
  0xfb   :  { %817 = vst.msk [vmem:[%s1864_s4 + $0x30] sm:$0xff] %vm810_vm1, %v752_v61  ;;  %849 = vst.msk [vmem:[%s1864_s4 + $0x130] sm:$0xff] %vm810_vm1, %v784_v62  ;;  %v683_v5 = vmul.f32 %v1469_v13, %v389_v3  ;;  %v715_v6 = vmul.f32 %v1469_v13, %v549_v4 }
  0xfc   :  { %v755_v7 = vadd.f32 %v1474_v15, %v684_v1  ;;  %v787_v8 = vadd.f32 %v1474_v15, %v716_v2 }
  0xfd   :  { %v754_v9 = vadd.f32 %v1474_v15, %v683_v5  ;;  %v786_v10 = vadd.f32 %v1474_v15, %v715_v6  ;;  %v1053_v11 = vpop.f32.mrb[10].mxu0  ;;  %v1101_v12 = vpop.f32.mrb[10].mxu1 }
  0xfe   :  { %820 = vst.msk [vmem:[%s1864_s4 + $0x48] sm:$0xff] %vm810_vm1, %v755_v7  ;;  %852 = vst.msk [vmem:[%s1864_s4 + $0x148] sm:$0xff] %vm810_vm1, %v787_v8  ;;  %v686_v14 = vmul.f32 %v1053_v11, %v1469_v13  ;;  %v718_v16 = vmul.f32 %v1101_v12, %v1469_v13  ;;  %v399_v17 = vpop.f32.mrb[11].mxu0  ;;  %v559_v18 = vpop.f32.mrb[11].mxu1 }
  0xff   :  { %819 = vst.msk [vmem:[%s1864_s4 + $0x40] sm:$0xff] %vm810_vm1, %v754_v9  ;;  %851 = vst.msk [vmem:[%s1864_s4 + $0x140] sm:$0xff] %vm810_vm1, %v786_v10  ;;  %v685_v19 = vmul.f32 %v1469_v13, %v399_v17  ;;  %v717_v20 = vmul.f32 %v1469_v13, %v559_v18 }
 0x100   :  { %v757_v21 = vadd.f32 %v1474_v15, %v686_v14  ;;  %v789_v22 = vadd.f32 %v1474_v15, %v718_v16 }
 0x101   :  { %v756_v23 = vadd.f32 %v1474_v15, %v685_v19  ;;  %v788_v24 = vadd.f32 %v1474_v15, %v717_v20  ;;  %v1056_v25 = vpop.f32.mrb[12].mxu0  ;;  %v1104_v26 = vpop.f32.mrb[12].mxu1 }
 0x102   :  { %822 = vst.msk [vmem:[%s1864_s4 + $0x58] sm:$0xff] %vm810_vm1, %v757_v21  ;;  %854 = vst.msk [vmem:[%s1864_s4 + $0x158] sm:$0xff] %vm810_vm1, %v789_v22  ;;  %v688_v27 = vmul.f32 %v1056_v25, %v1469_v13  ;;  %v720_v28 = vmul.f32 %v1104_v26, %v1469_v13  ;;  %v409_v29 = vpop.f32.mrb[13].mxu0  ;;  %v569_v30 = vpop.f32.mrb[13].mxu1 }
 0x103   :  { %821 = vst.msk [vmem:[%s1864_s4 + $0x50] sm:$0xff] %vm810_vm1, %v756_v23  ;;  %853 = vst.msk [vmem:[%s1864_s4 + $0x150] sm:$0xff] %vm810_vm1, %v788_v24  ;;  %v687_v31 = vmul.f32 %v1469_v13, %v409_v29  ;;  %v719_v32 = vmul.f32 %v1469_v13, %v569_v30 }
 0x104   :  { %v759_v33 = vadd.f32 %v1474_v15, %v688_v27  ;;  %v791_v34 = vadd.f32 %v1474_v15, %v720_v28 }
 0x105   :  { %v758_v35 = vadd.f32 %v1474_v15, %v687_v31  ;;  %v790_v36 = vadd.f32 %v1474_v15, %v719_v32  ;;  %v1059_v37 = vpop.f32.mrb[14].mxu0  ;;  %v1107_v38 = vpop.f32.mrb[14].mxu1 }
 0x106   :  { %824 = vst.msk [vmem:[%s1864_s4 + $0x68] sm:$0xff] %vm810_vm1, %v759_v33  ;;  %856 = vst.msk [vmem:[%s1864_s4 + $0x168] sm:$0xff] %vm810_vm1, %v791_v34  ;;  %v690_v39 = vmul.f32 %v1059_v37, %v1469_v13  ;;  %v722_v40 = vmul.f32 %v1107_v38, %v1469_v13  ;;  %v419_v41 = vpop.f32.mrb[15].mxu0  ;;  %v579_v42 = vpop.f32.mrb[15].mxu1 }
 0x107   :  { %823 = vst.msk [vmem:[%s1864_s4 + $0x60] sm:$0xff] %vm810_vm1, %v758_v35  ;;  %855 = vst.msk [vmem:[%s1864_s4 + $0x160] sm:$0xff] %vm810_vm1, %v790_v36  ;;  %v689_v43 = vmul.f32 %v1469_v13, %v419_v41  ;;  %v721_v44 = vmul.f32 %v1469_v13, %v579_v42 }
 0x108   :  { %v761_v45 = vadd.f32 %v1474_v15, %v690_v39  ;;  %v793_v46 = vadd.f32 %v1474_v15, %v722_v40 }
 0x109   :  { %v760_v47 = vadd.f32 %v1474_v15, %v689_v43  ;;  %v792_v48 = vadd.f32 %v1474_v15, %v721_v44  ;;  %v1062_v49 = vpop.f32.mrb[16].mxu0  ;;  %v1110_v50 = vpop.f32.mrb[16].mxu1 }
 0x10a   :  { %826 = vst.msk [vmem:[%s1864_s4 + $0x78] sm:$0xff] %vm810_vm1, %v761_v45  ;;  %858 = vst.msk [vmem:[%s1864_s4 + $0x178] sm:$0xff] %vm810_vm1, %v793_v46  ;;  %v692_v51 = vmul.f32 %v1062_v49, %v1469_v13  ;;  %v724_v52 = vmul.f32 %v1110_v50, %v1469_v13  ;;  %v429_v53 = vpop.f32.mrb[17].mxu0  ;;  %v589_v54 = vpop.f32.mrb[17].mxu1 }
 0x10b   :  { %825 = vst.msk [vmem:[%s1864_s4 + $0x70] sm:$0xff] %vm810_vm1, %v760_v47  ;;  %857 = vst.msk [vmem:[%s1864_s4 + $0x170] sm:$0xff] %vm810_vm1, %v792_v48  ;;  %v691_v55 = vmul.f32 %v1469_v13, %v429_v53  ;;  %v723_v56 = vmul.f32 %v1469_v13, %v589_v54 }
 0x10c   :  { %v763_v57 = vadd.f32 %v1474_v15, %v692_v51  ;;  %v795_v58 = vadd.f32 %v1474_v15, %v724_v52 }
 0x10d   :  { %v762_v59 = vadd.f32 %v1474_v15, %v691_v55  ;;  %v794_v60 = vadd.f32 %v1474_v15, %v723_v56  ;;  %v1065_v61 = vpop.f32.mrb[18].mxu0  ;;  %v1113_v62 = vpop.f32.mrb[18].mxu1 }
 0x10e   :  { %828 = vst.msk [vmem:[%s1864_s4 + $0x88] sm:$0xff] %vm810_vm1, %v763_v57  ;;  %860 = vst.msk [vmem:[%s1864_s4 + $0x188] sm:$0xff] %vm810_vm1, %v795_v58  ;;  %v694_v63 = vmul.f32 %v1065_v61, %v1469_v13  ;;  %v726_v0 = vmul.f32 %v1113_v62, %v1469_v13  ;;  %v439_v1 = vpop.f32.mrb[19].mxu0  ;;  %v599_v2 = vpop.f32.mrb[19].mxu1 }
 0x10f   :  { %827 = vst.msk [vmem:[%s1864_s4 + $0x80] sm:$0xff] %vm810_vm1, %v762_v59  ;;  %859 = vst.msk [vmem:[%s1864_s4 + $0x180] sm:$0xff] %vm810_vm1, %v794_v60  ;;  %v693_v3 = vmul.f32 %v1469_v13, %v439_v1  ;;  %v725_v4 = vmul.f32 %v1469_v13, %v599_v2 }
 0x110   :  { %v765_v5 = vadd.f32 %v1474_v15, %v694_v63  ;;  %v797_v6 = vadd.f32 %v1474_v15, %v726_v0 }
 0x111   :  { %v764_v7 = vadd.f32 %v1474_v15, %v693_v3  ;;  %v796_v8 = vadd.f32 %v1474_v15, %v725_v4  ;;  %v1068_v9 = vpop.f32.mrb[20].mxu0  ;;  %v1116_v10 = vpop.f32.mrb[20].mxu1 }
 0x112   :  { %830 = vst.msk [vmem:[%s1864_s4 + $0x98] sm:$0xff] %vm810_vm1, %v765_v5  ;;  %862 = vst.msk [vmem:[%s1864_s4 + $0x198] sm:$0xff] %vm810_vm1, %v797_v6  ;;  %v696_v11 = vmul.f32 %v1068_v9, %v1469_v13  ;;  %v728_v12 = vmul.f32 %v1116_v10, %v1469_v13  ;;  %v449_v14 = vpop.f32.mrb[21].mxu0  ;;  %v609_v16 = vpop.f32.mrb[21].mxu1 }
 0x113   :  { %829 = vst.msk [vmem:[%s1864_s4 + $0x90] sm:$0xff] %vm810_vm1, %v764_v7  ;;  %861 = vst.msk [vmem:[%s1864_s4 + $0x190] sm:$0xff] %vm810_vm1, %v796_v8  ;;  %v695_v17 = vmul.f32 %v1469_v13, %v449_v14  ;;  %v727_v18 = vmul.f32 %v1469_v13, %v609_v16 }
 0x114   :  { %v767_v19 = vadd.f32 %v1474_v15, %v696_v11  ;;  %v799_v20 = vadd.f32 %v1474_v15, %v728_v12 }
 0x115   :  { %v766_v21 = vadd.f32 %v1474_v15, %v695_v17  ;;  %v798_v22 = vadd.f32 %v1474_v15, %v727_v18  ;;  %v1071_v23 = vpop.f32.mrb[22].mxu0  ;;  %v1119_v24 = vpop.f32.mrb[22].mxu1 }
 0x116   :  { %832 = vst.msk [vmem:[%s1864_s4 + $0xa8] sm:$0xff] %vm810_vm1, %v767_v19  ;;  %864 = vst.msk [vmem:[%s1864_s4 + $0x1a8] sm:$0xff] %vm810_vm1, %v799_v20  ;;  %v698_v25 = vmul.f32 %v1071_v23, %v1469_v13  ;;  %v730_v26 = vmul.f32 %v1119_v24, %v1469_v13  ;;  %v459_v27 = vpop.f32.mrb[23].mxu0  ;;  %v619_v28 = vpop.f32.mrb[23].mxu1 }
 0x117   :  { %831 = vst.msk [vmem:[%s1864_s4 + $0xa0] sm:$0xff] %vm810_vm1, %v766_v21  ;;  %863 = vst.msk [vmem:[%s1864_s4 + $0x1a0] sm:$0xff] %vm810_vm1, %v798_v22  ;;  %v697_v29 = vmul.f32 %v1469_v13, %v459_v27  ;;  %v729_v30 = vmul.f32 %v1469_v13, %v619_v28 }
 0x118   :  { %v769_v31 = vadd.f32 %v1474_v15, %v698_v25  ;;  %v801_v32 = vadd.f32 %v1474_v15, %v730_v26 }
 0x119   :  { %v768_v33 = vadd.f32 %v1474_v15, %v697_v29  ;;  %v800_v34 = vadd.f32 %v1474_v15, %v729_v30  ;;  %v1074_v35 = vpop.f32.mrb[24].mxu0  ;;  %v1122_v36 = vpop.f32.mrb[24].mxu1 }
 0x11a   :  { %834 = vst.msk [vmem:[%s1864_s4 + $0xb8] sm:$0xff] %vm810_vm1, %v769_v31  ;;  %866 = vst.msk [vmem:[%s1864_s4 + $0x1b8] sm:$0xff] %vm810_vm1, %v801_v32  ;;  %v700_v37 = vmul.f32 %v1074_v35, %v1469_v13  ;;  %v732_v38 = vmul.f32 %v1122_v36, %v1469_v13  ;;  %v469_v39 = vpop.f32.mrb[25].mxu0  ;;  %v629_v40 = vpop.f32.mrb[25].mxu1 }
 0x11b   :  { %833 = vst.msk [vmem:[%s1864_s4 + $0xb0] sm:$0xff] %vm810_vm1, %v768_v33  ;;  %865 = vst.msk [vmem:[%s1864_s4 + $0x1b0] sm:$0xff] %vm810_vm1, %v800_v34  ;;  %v699_v41 = vmul.f32 %v1469_v13, %v469_v39  ;;  %v731_v42 = vmul.f32 %v1469_v13, %v629_v40 }
 0x11c   :  { %v771_v43 = vadd.f32 %v1474_v15, %v700_v37  ;;  %v803_v44 = vadd.f32 %v1474_v15, %v732_v38 }
 0x11d   :  { %v770_v45 = vadd.f32 %v1474_v15, %v699_v41  ;;  %v802_v46 = vadd.f32 %v1474_v15, %v731_v42  ;;  %v1077_v47 = vpop.f32.mrb[26].mxu0  ;;  %v1125_v48 = vpop.f32.mrb[26].mxu1 }
 0x11e   :  { %836 = vst.msk [vmem:[%s1864_s4 + $0xc8] sm:$0xff] %vm810_vm1, %v771_v43  ;;  %868 = vst.msk [vmem:[%s1864_s4 + $0x1c8] sm:$0xff] %vm810_vm1, %v803_v44  ;;  %v702_v49 = vmul.f32 %v1077_v47, %v1469_v13  ;;  %v734_v50 = vmul.f32 %v1125_v48, %v1469_v13  ;;  %v479_v51 = vpop.f32.mrb[27].mxu0  ;;  %v639_v52 = vpop.f32.mrb[27].mxu1 }
 0x11f   :  { %835 = vst.msk [vmem:[%s1864_s4 + $0xc0] sm:$0xff] %vm810_vm1, %v770_v45  ;;  %867 = vst.msk [vmem:[%s1864_s4 + $0x1c0] sm:$0xff] %vm810_vm1, %v802_v46  ;;  %v701_v53 = vmul.f32 %v1469_v13, %v479_v51  ;;  %v733_v54 = vmul.f32 %v1469_v13, %v639_v52 }
 0x120   :  { %v773_v55 = vadd.f32 %v1474_v15, %v702_v49  ;;  %v805_v56 = vadd.f32 %v1474_v15, %v734_v50 }
 0x121   :  { %v772_v57 = vadd.f32 %v1474_v15, %v701_v53  ;;  %v804_v58 = vadd.f32 %v1474_v15, %v733_v54  ;;  %v1080_v59 = vpop.f32.mrb[28].mxu0  ;;  %v1128_v60 = vpop.f32.mrb[28].mxu1 }
 0x122   :  { %838 = vst.msk [vmem:[%s1864_s4 + $0xd8] sm:$0xff] %vm810_vm1, %v773_v55  ;;  %870 = vst.msk [vmem:[%s1864_s4 + $0x1d8] sm:$0xff] %vm810_vm1, %v805_v56  ;;  %v704_v61 = vmul.f32 %v1080_v59, %v1469_v13  ;;  %v736_v62 = vmul.f32 %v1128_v60, %v1469_v13  ;;  %v489_v63 = vpop.f32.mrb[29].mxu0  ;;  %v649_v0 = vpop.f32.mrb[29].mxu1 }
 0x123   :  { %837 = vst.msk [vmem:[%s1864_s4 + $0xd0] sm:$0xff] %vm810_vm1, %v772_v57  ;;  %869 = vst.msk [vmem:[%s1864_s4 + $0x1d0] sm:$0xff] %vm810_vm1, %v804_v58  ;;  %v703_v1 = vmul.f32 %v1469_v13, %v489_v63  ;;  %v735_v2 = vmul.f32 %v1469_v13, %v649_v0 }
 0x124   :  { %v775_v3 = vadd.f32 %v1474_v15, %v704_v61  ;;  %v807_v4 = vadd.f32 %v1474_v15, %v736_v62 }
 0x125   :  { %v774_v5 = vadd.f32 %v1474_v15, %v703_v1  ;;  %v806_v6 = vadd.f32 %v1474_v15, %v735_v2  ;;  %v1083_v7 = vpop.f32.mrb[30].mxu0  ;;  %v1131_v8 = vpop.f32.mrb[30].mxu1 }
 0x126   :  { %840 = vst.msk [vmem:[%s1864_s4 + $0xe8] sm:$0xff] %vm810_vm1, %v775_v3  ;;  %872 = vst.msk [vmem:[%s1864_s4 + $0x1e8] sm:$0xff] %vm810_vm1, %v807_v4  ;;  %v706_v9 = vmul.f32 %v1083_v7, %v1469_v13  ;;  %v738_v10 = vmul.f32 %v1131_v8, %v1469_v13  ;;  %v499_v11 = vpop.f32.mrb[31].mxu0  ;;  %v659_v12 = vpop.f32.mrb[31].mxu1 }
 0x127   :  { %839 = vst.msk [vmem:[%s1864_s4 + $0xe0] sm:$0xff] %vm810_vm1, %v774_v5  ;;  %871 = vst.msk [vmem:[%s1864_s4 + $0x1e0] sm:$0xff] %vm810_vm1, %v806_v6  ;;  %v705_v14 = vmul.f32 %v1469_v13, %v499_v11  ;;  %v737_v16 = vmul.f32 %v1469_v13, %v659_v12 }
 0x128   :  { %v777_v17 = vadd.f32 %v1474_v15, %v706_v9  ;;  %v809_v18 = vadd.f32 %v1474_v15, %v738_v10 }
 0x129   :  { %v776_v19 = vadd.f32 %v1474_v15, %v705_v14  ;;  %v808_v20 = vadd.f32 %v1474_v15, %v737_v16 }
 0x12a   :  { %842 = vst.msk [vmem:[%s1864_s4 + $0xf8] sm:$0xff] %vm810_vm1, %v777_v17  ;;  %874 = vst.msk [vmem:[%s1864_s4 + $0x1f8] sm:$0xff] %vm810_vm1, %v809_v18 }
 0x12b   :  { %841 = vst.msk [vmem:[%s1864_s4 + $0xf0] sm:$0xff] %vm810_vm1, %v776_v19  ;;  %873 = vst.msk [vmem:[%s1864_s4 + $0x1f0] sm:$0xff] %vm810_vm1, %v808_v20 }

</bundles_post_ra>
